<compile_context>
chip_gen: v6e
topology: v6e:2x2x1
jax: 0.10.0
libtpu: 0.0.40
codegen_flags: <defaults>
</compile_context>

<pallas_src>
import math

import jax
import jax.numpy as jnp
from jax.experimental import pallas as pl
from jax.experimental.pallas import tpu as pltpu

# ---- small synthetic BERT config (stands in for bert-base-chinese: 768->32 etc.) ----
BATCH = 2
SEQ = 8
HIDDEN = 32
HEADS = 4
HEAD_DIM = HIDDEN // HEADS
INTERMEDIATE = 64
LAYERS = 2
VOCAB = 50
TYPE_VOCAB = 2
MAX_POS = 16
NUM_LABELS = 5              # nn.Linear(768, 5) in the reference module
NUM_LABELS_PAD = 128        # lane-dense padded classifier output
LN_EPS = 1e-12


# ---------------------------------------------------------------------------
# Kernel: one grid step == (one batch element, one encoder layer).
# Hidden state x lives in a VMEM scratch carried across the layer axis.
# ---------------------------------------------------------------------------
def _bert_layer_kernel(x_ref, bias_ref, eg_ref, eb_ref,
                       wq_ref, bq_ref, wk_ref, bk_ref, wv_ref, bv_ref,
                       wo_ref, bo_ref, l1g_ref, l1b_ref,
                       wi_ref, bi_ref, wo2_ref, bo2_ref, l2g_ref, l2b_ref,
                       pw_ref, pb_ref, cw_ref, cb_ref,
                       o_ref, x_sc):
    l = pl.program_id(1)
    bf16 = jnp.bfloat16

    def layer_norm(v, g, b):
        mu = jnp.mean(v, axis=-1, keepdims=True)
        var = jnp.mean(jnp.square(v - mu), axis=-1, keepdims=True)
        return (v - mu) * jax.lax.rsqrt(var + LN_EPS) * g + b

    # ---- embeddings LayerNorm (first layer step only) -> scratch carry ----
    @pl.when(l == 0)
    def _():
        x_sc[...] = layer_norm(x_ref[...], eg_ref[...], eb_ref[...])

    x = x_sc[...]                                                   # (S, H) f32
    x_b = jnp.broadcast_to(x.astype(bf16)[None], (HEADS, SEQ, HIDDEN))

    # ---- self-attention: head-batched matmuls, bf16 MXU operands, f32 acc ----
    # 1/sqrt(dh) is pre-folded into wq / bq at init.
    q = jnp.einsum('hsd,hde->hse', x_b, wq_ref[0],
                   preferred_element_type=jnp.float32) + bq_ref[0]  # (HEADS, S, dh)
    k = jnp.einsum('hsd,hde->hse', x_b, wk_ref[0],
                   preferred_element_type=jnp.float32) + bk_ref[0]
    v = jnp.einsum('hsd,hde->hse', x_b, wv_ref[0],
                   preferred_element_type=jnp.float32) + bv_ref[0]

    s = jnp.einsum('hqd,hkd->hqk', q.astype(bf16), k.astype(bf16),
                   preferred_element_type=jnp.float32)              # (HEADS, S, S)
    s = s + bias_ref[...]                                           # (1,1,S) additive mask
    m = jnp.max(s, axis=-1, keepdims=True)
    p = jnp.exp(s - m)
    p = p * pl.reciprocal(jnp.sum(p, axis=-1, keepdims=True), approx=True)

    ctx = jnp.einsum('hqk,hkd->hqd', p.astype(bf16), v.astype(bf16),
                     preferred_element_type=jnp.float32)            # (HEADS, S, dh)
    attn = jnp.einsum('hqd,hde->hqe', ctx.astype(bf16), wo_ref[0],
                      preferred_element_type=jnp.float32)           # (HEADS, S, H)
    attn = jnp.sum(attn, axis=0) + bo_ref[0]                        # (S, H)
    x = layer_norm(attn + x, l1g_ref[0], l1b_ref[0])

    # ---- feed-forward (bf16 matmuls, f32 GELU) ----
    inter = jnp.dot(x.astype(bf16), wi_ref[0],
                    preferred_element_type=jnp.float32) + bi_ref[0]  # (S, I)
    # TODO(synk): HF BERT uses exact erf-GELU; tanh-approx GELU (EUP-friendly) used here.
    c = jnp.float32(0.7978845608028654)  # sqrt(2/pi)
    inter = 0.5 * inter * (1.0 + jnp.tanh(c * (inter + 0.044715 * inter * inter * inter)))
    ffn = jnp.dot(inter.astype(bf16), wo2_ref[0],
                  preferred_element_type=jnp.float32) + bo2_ref[0]
    x = layer_norm(ffn + x, l2g_ref[0], l2b_ref[0])
    x_sc[...] = x

    # ---- pooler + classifier on the final layer step ----
    @pl.when(l == LAYERS - 1)
    def _():
        pooled = jnp.tanh(jnp.dot(x[0:1, :].astype(bf16), pw_ref[...],
                                  preferred_element_type=jnp.float32) + pb_ref[...])
        # dropout(p=0.5): identity at inference  # TODO(synk): training-mode dropout not applied
        logits = jnp.dot(pooled.astype(bf16), cw_ref[...],
                         preferred_element_type=jnp.float32) + cb_ref[...]  # (1, 128)
        o_ref[0] = jnp.maximum(logits, 0.0)


# ---------------------------------------------------------------------------
# Parameters (deterministic synthetic init — NOT a checkpoint load)
# Weights pre-shaped per-head / per-layer and stored in bf16 for the MXU.
# ---------------------------------------------------------------------------
def init_params(key):
    bf16 = jnp.bfloat16

    def nrm(k, shape):
        return 0.02 * jax.random.normal(k, shape, jnp.float32)

    def cols_to_heads(w):                     # (H, H) -> (HEADS, H, dh)
        return jnp.transpose(w.reshape(HIDDEN, HEADS, HEAD_DIM), (1, 0, 2))

    keys = iter(jax.random.split(key, 64))
    p = {}
    p['word_emb'] = nrm(next(keys), (VOCAB, HIDDEN))
    p['pos_emb'] = nrm(next(keys), (MAX_POS, HIDDEN))
    p['type_emb'] = nrm(next(keys), (TYPE_VOCAB, HIDDEN))
    p['emb_ln_g'] = jnp.ones((1, HIDDEN), jnp.float32)
    p['emb_ln_b'] = jnp.zeros((1, HIDDEN), jnp.float32)

    scale = 1.0 / (HEAD_DIM ** 0.5)
    wq_l, wk_l, wv_l, wo_l, wi_l, wo2_l = [], [], [], [], [], []
    for _ in range(LAYERS):
        wq_l.append(cols_to_heads(nrm(next(keys), (HIDDEN, HIDDEN))) * scale)  # scale folded
        wk_l.append(cols_to_heads(nrm(next(keys), (HIDDEN, HIDDEN))))
        wv_l.append(cols_to_heads(nrm(next(keys), (HIDDEN, HIDDEN))))
        wo_l.append(nrm(next(keys), (HIDDEN, HIDDEN)).reshape(HEADS, HEAD_DIM, HIDDEN))
        wi_l.append(nrm(next(keys), (HIDDEN, INTERMEDIATE)))
        wo2_l.append(nrm(next(keys), (INTERMEDIATE, HIDDEN)))

    p['wq'] = jnp.stack(wq_l).astype(bf16)            # (L, HEADS, H, dh)
    p['wk'] = jnp.stack(wk_l).astype(bf16)
    p['wv'] = jnp.stack(wv_l).astype(bf16)
    p['wo'] = jnp.stack(wo_l).astype(bf16)            # (L, HEADS, dh, H)
    p['wi'] = jnp.stack(wi_l).astype(bf16)            # (L, H, I)
    p['wo2'] = jnp.stack(wo2_l).astype(bf16)          # (L, I, H)

    p['bq'] = jnp.zeros((LAYERS, HEADS, 1, HEAD_DIM), jnp.float32)  # scale fold is a no-op on zeros
    p['bk'] = jnp.zeros((LAYERS, HEADS, 1, HEAD_DIM), jnp.float32)
    p['bv'] = jnp.zeros((LAYERS, HEADS, 1, HEAD_DIM), jnp.float32)
    p['bo'] = jnp.zeros((LAYERS, 1, HIDDEN), jnp.float32)
    p['ln1_g'] = jnp.ones((LAYERS, 1, HIDDEN), jnp.float32)
    p['ln1_b'] = jnp.zeros((LAYERS, 1, HIDDEN), jnp.float32)
    p['bi'] = jnp.zeros((LAYERS, 1, INTERMEDIATE), jnp.float32)
    p['bo2'] = jnp.zeros((LAYERS, 1, HIDDEN), jnp.float32)
    p['ln2_g'] = jnp.ones((LAYERS, 1, HIDDEN), jnp.float32)
    p['ln2_b'] = jnp.zeros((LAYERS, 1, HIDDEN), jnp.float32)

    p['pool_w'] = nrm(next(keys), (HIDDEN, HIDDEN)).astype(bf16)
    p['pool_b'] = jnp.zeros((1, HIDDEN), jnp.float32)
    cls_w = nrm(next(keys), (HIDDEN, NUM_LABELS))
    # pad classifier to 128 output lanes -> unmasked lane-dense store; slice outside kernel
    p['cls_w_pad'] = jnp.pad(cls_w, ((0, 0), (0, NUM_LABELS_PAD - NUM_LABELS))).astype(bf16)
    p['cls_b_pad'] = jnp.zeros((1, NUM_LABELS_PAD), jnp.float32)
    return p


def _cost_estimate(B, operands):
    mm = lambda m, k, n: 2 * m * k * n
    per_layer = (3 * mm(SEQ, HIDDEN, HIDDEN)           # q/k/v projections
                 + mm(HEADS * SEQ, HEAD_DIM, SEQ)       # scores
                 + mm(HEADS * SEQ, SEQ, HEAD_DIM)       # p @ v
                 + mm(SEQ, HIDDEN, HIDDEN)              # output projection
                 + mm(SEQ, HIDDEN, INTERMEDIATE)
                 + mm(SEQ, INTERMEDIATE, HIDDEN))
    flops = B * (LAYERS * per_layer + mm(1, HIDDEN, HIDDEN) + mm(1, HIDDEN, NUM_LABELS_PAD))
    transcendentals = B * (LAYERS * (HEADS * SEQ * SEQ + SEQ * INTERMEDIATE) + HIDDEN)
    bytes_accessed = sum(math.prod(a.shape) * jnp.dtype(a.dtype).itemsize for a in operands)
    bytes_accessed += B * NUM_LABELS_PAD * 4            # output slab
    return pl.CostEstimate(flops=flops, transcendentals=transcendentals,
                           bytes_accessed=bytes_accessed)


# ---------------------------------------------------------------------------
# Forward pass (mirrors BertClassifier.forward)
# ---------------------------------------------------------------------------
def bert_classifier_forward(params, input_id, mask):
    B, S = input_id.shape

    # glue: embedding gather + sum (word + position + token_type=0), outside the kernel
    tok = jnp.take(params['word_emb'], input_id, axis=0)           # (B, S, H)
    pos = params['pos_emb'][:S][None, :, :]
    typ = params['type_emb'][0][None, None, :]
    x_emb = (tok + pos + typ).reshape(B * S, HIDDEN).astype(jnp.float32)

    # extended attention mask: (1 - mask) * -10000, shaped (B, 1, S) once
    attn_bias = ((1.0 - mask.astype(jnp.float32)) * -10000.0).reshape(B, 1, S)

    c2 = lambda b, l: (0, 0)                # constant 2-D inputs
    lw4 = lambda b, l: (l, 0, 0, 0)         # per-layer 4-D weight / bias stacks
    lw3 = lambda b, l: (l, 0, 0)            # per-layer 3-D stacks

    in_specs = [
        pl.BlockSpec((SEQ, HIDDEN), lambda b, l: (b, 0)),                  # x_emb  (B*S, H)
        pl.BlockSpec((1, 1, SEQ), lambda b, l: (b, 0, 0)),                 # bias   (B, 1, S)
        pl.BlockSpec((1, HIDDEN), c2),                                     # emb_ln_g
        pl.BlockSpec((1, HIDDEN), c2),                                     # emb_ln_b
        pl.BlockSpec((1, HEADS, HIDDEN, HEAD_DIM), lw4),                   # wq
        pl.BlockSpec((1, HEADS, 1, HEAD_DIM), lw4),                        # bq
        pl.BlockSpec((1, HEADS, HIDDEN, HEAD_DIM), lw4),                   # wk
        pl.BlockSpec((1, HEADS, 1, HEAD_DIM), lw4),                        # bk
        pl.BlockSpec((1, HEADS, HIDDEN, HEAD_DIM), lw4),                   # wv
        pl.BlockSpec((1, HEADS, 1, HEAD_DIM), lw4),                        # bv
        pl.BlockSpec((1, HEADS, HEAD_DIM, HIDDEN), lw4),                   # wo
        pl.BlockSpec((1, 1, HIDDEN), lw3),                                 # bo
        pl.BlockSpec((1, 1, HIDDEN), lw3),                                 # ln1_g
        pl.BlockSpec((1, 1, HIDDEN), lw3),                                 # ln1_b
        pl.BlockSpec((1, HIDDEN, INTERMEDIATE), lw3),                      # wi
        pl.BlockSpec((1, 1, INTERMEDIATE), lw3),                           # bi
        pl.BlockSpec((1, INTERMEDIATE, HIDDEN), lw3),                      # wo2
        pl.BlockSpec((1, 1, HIDDEN), lw3),                                 # bo2
        pl.BlockSpec((1, 1, HIDDEN), lw3),                                 # ln2_g
        pl.BlockSpec((1, 1, HIDDEN), lw3),                                 # ln2_b
        pl.BlockSpec((HIDDEN, HIDDEN), c2),                                # pool_w
        pl.BlockSpec((1, HIDDEN), c2),                                     # pool_b
        pl.BlockSpec((HIDDEN, NUM_LABELS_PAD), c2),                        # cls_w (padded)
        pl.BlockSpec((1, NUM_LABELS_PAD), c2),                             # cls_b (padded)
    ]

    operands = (
        x_emb, attn_bias,
        params['emb_ln_g'], params['emb_ln_b'],
        params['wq'], params['bq'], params['wk'], params['bk'],
        params['wv'], params['bv'],
        params['wo'], params['bo'], params['ln1_g'], params['ln1_b'],
        params['wi'], params['bi'], params['wo2'], params['bo2'],
        params['ln2_g'], params['ln2_b'],
        params['pool_w'], params['pool_b'],
        params['cls_w_pad'], params['cls_b_pad'],
    )

    out = pl.pallas_call(
        _bert_layer_kernel,
        out_shape=jax.ShapeDtypeStruct((B, 1, NUM_LABELS_PAD), jnp.float32),
        grid=(B, LAYERS),
        in_specs=in_specs,
        out_specs=pl.BlockSpec((1, 1, NUM_LABELS_PAD), lambda b, l: (b, 0, 0)),
        scratch_shapes=[pltpu.VMEM((SEQ, HIDDEN), jnp.float32)],
        compiler_params=pltpu.CompilerParams(
            dimension_semantics=("parallel", "arbitrary")),  # v7x: one batch elem per TC
        cost_estimate=_cost_estimate(B, operands),
    )(*operands)
    return out[:, 0, :NUM_LABELS]                                  # (B, 5)


if __name__ == "__main__":
    key = jax.random.PRNGKey(0)
    k_param, k_ids = jax.random.split(key)

    params = init_params(k_param)
    input_id = jax.random.randint(k_ids, (BATCH, SEQ), 0, VOCAB, dtype=jnp.int32)
    lengths = jnp.array([SEQ, 5], dtype=jnp.int32)
    mask = (jnp.arange(SEQ)[None, :] < lengths[:, None]).astype(jnp.int32)   # (B, S)

    fwd = jax.jit(bert_classifier_forward)
    out = fwd(params, input_id, mask)
    out = jax.block_until_ready(out)
    assert out.shape == (BATCH, NUM_LABELS)
    assert bool(jnp.all(out >= 0.0))          # ReLU output
    print("KERNEL_OK")
</pallas_src>

<mosaic_0001>
module attributes {stable_mosaic.version = 11 : i64} {
  func.func @_bert_layer_kernel(%arg0: i32, %arg1: i32, %arg2: memref<8x32xf32, #tpu.memory_space<vmem>>, %arg3: memref<1x1x8xf32, #tpu.memory_space<vmem>>, %arg4: memref<1x32xf32, #tpu.memory_space<vmem>>, %arg5: memref<1x32xf32, #tpu.memory_space<vmem>>, %arg6: memref<1x4x32x8xbf16, #tpu.memory_space<vmem>>, %arg7: memref<1x4x1x8xf32, #tpu.memory_space<vmem>>, %arg8: memref<1x4x32x8xbf16, #tpu.memory_space<vmem>>, %arg9: memref<1x4x1x8xf32, #tpu.memory_space<vmem>>, %arg10: memref<1x4x32x8xbf16, #tpu.memory_space<vmem>>, %arg11: memref<1x4x1x8xf32, #tpu.memory_space<vmem>>, %arg12: memref<1x4x8x32xbf16, #tpu.memory_space<vmem>>, %arg13: memref<1x1x32xf32, #tpu.memory_space<vmem>>, %arg14: memref<1x1x32xf32, #tpu.memory_space<vmem>>, %arg15: memref<1x1x32xf32, #tpu.memory_space<vmem>>, %arg16: memref<1x32x64xbf16, #tpu.memory_space<vmem>>, %arg17: memref<1x1x64xf32, #tpu.memory_space<vmem>>, %arg18: memref<1x64x32xbf16, #tpu.memory_space<vmem>>, %arg19: memref<1x1x32xf32, #tpu.memory_space<vmem>>, %arg20: memref<1x1x32xf32, #tpu.memory_space<vmem>>, %arg21: memref<1x1x32xf32, #tpu.memory_space<vmem>>, %arg22: memref<32x32xbf16, #tpu.memory_space<vmem>>, %arg23: memref<1x32xf32, #tpu.memory_space<vmem>>, %arg24: memref<32x128xbf16, #tpu.memory_space<vmem>>, %arg25: memref<1x128xf32, #tpu.memory_space<vmem>>, %arg26: memref<1x1x128xf32, #tpu.memory_space<vmem>>, %arg27: memref<8x32xf32, #tpu.memory_space<vmem>>) attributes {dimension_semantics = [#tpu.dimension_semantics<parallel>, #tpu.dimension_semantics<arbitrary>], iteration_bounds = array<i64: 2, 2>, scalar_prefetch = 0 : i64, scratch_operands = 1 : i64, tpu.core_type = #tpu.core_type<tc>, window_params = [{transform_indices = @transform_0, window_bounds = array<i64: 8, 32>}, {transform_indices = @transform_1, window_bounds = array<i64: 1, 1, 8>}, {pipeline_mode = #tpu.pipeline_mode<synchronous>, transform_indices = @transform_2, window_bounds = array<i64: 1, 32>}, {pipeline_mode = #tpu.pipeline_mode<synchronous>, transform_indices = @transform_3, window_bounds = array<i64: 1, 32>}, {transform_indices = @transform_4, window_bounds = array<i64: 1, 4, 32, 8>}, {transform_indices = @transform_5, window_bounds = array<i64: 1, 4, 1, 8>}, {transform_indices = @transform_6, window_bounds = array<i64: 1, 4, 32, 8>}, {transform_indices = @transform_7, window_bounds = array<i64: 1, 4, 1, 8>}, {transform_indices = @transform_8, window_bounds = array<i64: 1, 4, 32, 8>}, {transform_indices = @transform_9, window_bounds = array<i64: 1, 4, 1, 8>}, {transform_indices = @transform_10, window_bounds = array<i64: 1, 4, 8, 32>}, {transform_indices = @transform_11, window_bounds = array<i64: 1, 1, 32>}, {transform_indices = @transform_12, window_bounds = array<i64: 1, 1, 32>}, {transform_indices = @transform_13, window_bounds = array<i64: 1, 1, 32>}, {transform_indices = @transform_14, window_bounds = array<i64: 1, 32, 64>}, {transform_indices = @transform_15, window_bounds = array<i64: 1, 1, 64>}, {transform_indices = @transform_16, window_bounds = array<i64: 1, 64, 32>}, {transform_indices = @transform_17, window_bounds = array<i64: 1, 1, 32>}, {transform_indices = @transform_18, window_bounds = array<i64: 1, 1, 32>}, {transform_indices = @transform_19, window_bounds = array<i64: 1, 1, 32>}, {pipeline_mode = #tpu.pipeline_mode<synchronous>, transform_indices = @transform_20, window_bounds = array<i64: 32, 32>}, {pipeline_mode = #tpu.pipeline_mode<synchronous>, transform_indices = @transform_21, window_bounds = array<i64: 1, 32>}, {pipeline_mode = #tpu.pipeline_mode<synchronous>, transform_indices = @transform_22, window_bounds = array<i64: 32, 128>}, {pipeline_mode = #tpu.pipeline_mode<synchronous>, transform_indices = @transform_23, window_bounds = array<i64: 1, 128>}, {transform_indices = @transform_24, window_bounds = array<i64: 1, 1, 128>}]} {
    %c0_i32 = arith.constant 0 : i32
    %0 = arith.cmpi eq, %arg1, %c0_i32 : i32
    %1 = arith.extui %0 : i1 to i32
    %c0_i32_0 = arith.constant 0 : i32
    %2 = arith.cmpi ne, %1, %c0_i32_0 : i32
    scf.if %2 {
      %c0_87 = arith.constant 0 : index
      %c0_88 = arith.constant 0 : index
      %144 = vector.load %arg2[%c0_87, %c0_88] : memref<8x32xf32, #tpu.memory_space<vmem>>, vector<8x32xf32>
      %c0_89 = arith.constant 0 : index
      %c0_90 = arith.constant 0 : index
      %145 = vector.load %arg4[%c0_89, %c0_90] : memref<1x32xf32, #tpu.memory_space<vmem>>, vector<1x32xf32>
      %c0_91 = arith.constant 0 : index
      %c0_92 = arith.constant 0 : index
      %146 = vector.load %arg5[%c0_91, %c0_92] : memref<1x32xf32, #tpu.memory_space<vmem>>, vector<1x32xf32>
      %cst_93 = arith.constant dense<0.000000e+00> : vector<8xf32>
      %147 = vector.multi_reduction <add>, %144, %cst_93 [1] : vector<8x32xf32> to vector<8xf32>
      %148 = vector.shape_cast %147 : vector<8xf32> to vector<8x1xf32>
      %cst_94 = arith.constant 3.200000e+01 : f32
      %149 = vector.broadcast %cst_94 : f32 to vector<8x1xf32>
      %150 = arith.divf %148, %149 : vector<8x1xf32>
      %151 = vector.broadcast %150 : vector<8x1xf32> to vector<8x32xf32>
      %152 = arith.subf %144, %151 : vector<8x32xf32>
      %153 = arith.mulf %152, %152 : vector<8x32xf32>
      %cst_95 = arith.constant dense<0.000000e+00> : vector<8xf32>
      %154 = vector.multi_reduction <add>, %153, %cst_95 [1] : vector<8x32xf32> to vector<8xf32>
      %155 = vector.shape_cast %154 : vector<8xf32> to vector<8x1xf32>
      %cst_96 = arith.constant 3.200000e+01 : f32
      %156 = vector.broadcast %cst_96 : f32 to vector<8x1xf32>
      %157 = arith.divf %155, %156 : vector<8x1xf32>
      %158 = vector.broadcast %150 : vector<8x1xf32> to vector<8x32xf32>
      %159 = arith.subf %144, %158 : vector<8x32xf32>
      %cst_97 = arith.constant 9.99999996E-13 : f32
      %160 = vector.broadcast %cst_97 : f32 to vector<8x1xf32>
      %161 = arith.addf %157, %160 : vector<8x1xf32>
      %162 = math.rsqrt %161 : vector<8x1xf32>
      %163 = vector.broadcast %162 : vector<8x1xf32> to vector<8x32xf32>
      %164 = arith.mulf %159, %163 : vector<8x32xf32>
      %165 = vector.broadcast %145 : vector<1x32xf32> to vector<8x32xf32>
      %166 = arith.mulf %164, %165 : vector<8x32xf32>
      %167 = vector.broadcast %146 : vector<1x32xf32> to vector<8x32xf32>
      %168 = arith.addf %166, %167 : vector<8x32xf32>
      %c0_98 = arith.constant 0 : index
      %c0_99 = arith.constant 0 : index
      %169 = vector.load %arg27[%c0_98, %c0_99] : memref<8x32xf32, #tpu.memory_space<vmem>>, vector<8x32xf32>
      tpu.vector_store %arg27[%c0_98, %c0_99], %168 {strides = array<i32>} : memref<8x32xf32, #tpu.memory_space<vmem>>, vector<8x32xf32>,
    } else {
    }
    %c0 = arith.constant 0 : index
    %c0_1 = arith.constant 0 : index
    %3 = vector.load %arg27[%c0, %c0_1] : memref<8x32xf32, #tpu.memory_space<vmem>>, vector<8x32xf32>
    %4 = arith.truncf %3 : vector<8x32xf32> to vector<8x32xbf16>
    %5 = vector.shape_cast %4 : vector<8x32xbf16> to vector<1x8x32xbf16>
    %6 = vector.shape_cast %5 : vector<1x8x32xbf16> to vector<1x8x32xbf16>
    %7 = vector.broadcast %6 : vector<1x8x32xbf16> to vector<4x8x32xbf16>
    %c0_2 = arith.constant 0 : index
    %c0_3 = arith.constant 0 : index
    %c0_4 = arith.constant 0 : index
    %c0_5 = arith.constant 0 : index
    %8 = vector.load %arg6[%c0_2, %c0_3, %c0_4, %c0_5] : memref<1x4x32x8xbf16, #tpu.memory_space<vmem>>, vector<1x4x32x8xbf16>
    %9 = vector.shape_cast %8 : vector<1x4x32x8xbf16> to vector<4x32x8xbf16>
    "tpu.trace_start"() <{level = 10 : i32, message = "hsd,hde->hse"}> : () -> ()
    %cst = arith.constant dense<0.000000e+00> : vector<4x8x8xf32>
    %10 = tpu.matmul %7, %9, %cst {dimension_numbers = #tpu.dot_dimension_numbers<[2], [1], [1], [2], [0, 0, 0, 1, 1, 2], [0], [0]>} : vector<4x8x32xbf16>, vector<4x32x8xbf16>, vector<4x8x8xf32> -> vector<4x8x8xf32>
    "tpu.trace_stop"() : () -> ()
    %c0_6 = arith.constant 0 : index
    %c0_7 = arith.constant 0 : index
    %c0_8 = arith.constant 0 : index
    %c0_9 = arith.constant 0 : index
    %11 = vector.load %arg7[%c0_6, %c0_7, %c0_8, %c0_9] : memref<1x4x1x8xf32, #tpu.memory_space<vmem>>, vector<1x4x1x8xf32>
    %12 = vector.shape_cast %11 : vector<1x4x1x8xf32> to vector<4x1x8xf32>
    %13 = vector.broadcast %12 : vector<4x1x8xf32> to vector<4x8x8xf32>
    %14 = arith.addf %10, %13 : vector<4x8x8xf32>
    %c0_10 = arith.constant 0 : index
    %c0_11 = arith.constant 0 : index
    %c0_12 = arith.constant 0 : index
    %c0_13 = arith.constant 0 : index
    %15 = vector.load %arg8[%c0_10, %c0_11, %c0_12, %c0_13] : memref<1x4x32x8xbf16, #tpu.memory_space<vmem>>, vector<1x4x32x8xbf16>
    %16 = vector.shape_cast %15 : vector<1x4x32x8xbf16> to vector<4x32x8xbf16>
    "tpu.trace_start"() <{level = 10 : i32, message = "hsd,hde->hse"}> : () -> ()
    %cst_14 = arith.constant dense<0.000000e+00> : vector<4x8x8xf32>
    %17 = tpu.matmul %7, %16, %cst_14 {dimension_numbers = #tpu.dot_dimension_numbers<[2], [1], [1], [2], [0, 0, 0, 1, 1, 2], [0], [0]>} : vector<4x8x32xbf16>, vector<4x32x8xbf16>, vector<4x8x8xf32> -> vector<4x8x8xf32>
    "tpu.trace_stop"() : () -> ()
    %c0_15 = arith.constant 0 : index
    %c0_16 = arith.constant 0 : index
    %c0_17 = arith.constant 0 : index
    %c0_18 = arith.constant 0 : index
    %18 = vector.load %arg9[%c0_15, %c0_16, %c0_17, %c0_18] : memref<1x4x1x8xf32, #tpu.memory_space<vmem>>, vector<1x4x1x8xf32>
    %19 = vector.shape_cast %18 : vector<1x4x1x8xf32> to vector<4x1x8xf32>
    %20 = vector.broadcast %19 : vector<4x1x8xf32> to vector<4x8x8xf32>
    %21 = arith.addf %17, %20 : vector<4x8x8xf32>
    %c0_19 = arith.constant 0 : index
    %c0_20 = arith.constant 0 : index
    %c0_21 = arith.constant 0 : index
    %c0_22 = arith.constant 0 : index
    %22 = vector.load %arg10[%c0_19, %c0_20, %c0_21, %c0_22] : memref<1x4x32x8xbf16, #tpu.memory_space<vmem>>, vector<1x4x32x8xbf16>
    %23 = vector.shape_cast %22 : vector<1x4x32x8xbf16> to vector<4x32x8xbf16>
    "tpu.trace_start"() <{level = 10 : i32, message = "hsd,hde->hse"}> : () -> ()
    %cst_23 = arith.constant dense<0.000000e+00> : vector<4x8x8xf32>
    %24 = tpu.matmul %7, %23, %cst_23 {dimension_numbers = #tpu.dot_dimension_numbers<[2], [1], [1], [2], [0, 0, 0, 1, 1, 2], [0], [0]>} : vector<4x8x32xbf16>, vector<4x32x8xbf16>, vector<4x8x8xf32> -> vector<4x8x8xf32>
    "tpu.trace_stop"() : () -> ()
    %c0_24 = arith.constant 0 : index
    %c0_25 = arith.constant 0 : index
    %c0_26 = arith.constant 0 : index
    %c0_27 = arith.constant 0 : index
    %25 = vector.load %arg11[%c0_24, %c0_25, %c0_26, %c0_27] : memref<1x4x1x8xf32, #tpu.memory_space<vmem>>, vector<1x4x1x8xf32>
    %26 = vector.shape_cast %25 : vector<1x4x1x8xf32> to vector<4x1x8xf32>
    %27 = vector.broadcast %26 : vector<4x1x8xf32> to vector<4x8x8xf32>
    %28 = arith.addf %24, %27 : vector<4x8x8xf32>
    %29 = arith.truncf %14 : vector<4x8x8xf32> to vector<4x8x8xbf16>
    %30 = arith.truncf %21 : vector<4x8x8xf32> to vector<4x8x8xbf16>
    "tpu.trace_start"() <{level = 10 : i32, message = "hqd,hkd->hqk"}> : () -> ()
    %cst_28 = arith.constant dense<0.000000e+00> : vector<4x8x8xf32>
    %31 = tpu.matmul %29, %30, %cst_28 {dimension_numbers = #tpu.dot_dimension_numbers<[2], [2], [1], [1], [0, 0, 0, 1, 1, 1], [0], [0]>} : vector<4x8x8xbf16>, vector<4x8x8xbf16>, vector<4x8x8xf32> -> vector<4x8x8xf32>
    "tpu.trace_stop"() : () -> ()
    %c0_29 = arith.constant 0 : index
    %c0_30 = arith.constant 0 : index
    %c0_31 = arith.constant 0 : index
    %32 = vector.load %arg3[%c0_29, %c0_30, %c0_31] : memref<1x1x8xf32, #tpu.memory_space<vmem>>, vector<1x1x8xf32>
    %33 = vector.broadcast %32 : vector<1x1x8xf32> to vector<4x8x8xf32>
    %34 = arith.addf %31, %33 : vector<4x8x8xf32>
    %cst_32 = arith.constant dense<0xFF800000> : vector<4x8xf32>
    %35 = vector.multi_reduction <maximumf>, %34, %cst_32 [2] : vector<4x8x8xf32> to vector<4x8xf32>
    %36 = vector.shape_cast %35 : vector<4x8xf32> to vector<4x8x1xf32>
    %37 = vector.broadcast %36 : vector<4x8x1xf32> to vector<4x8x8xf32>
    %38 = arith.subf %34, %37 : vector<4x8x8xf32>
    %39 = math.exp %38 : vector<4x8x8xf32>
    %cst_33 = arith.constant dense<0.000000e+00> : vector<4x8xf32>
    %40 = vector.multi_reduction <add>, %39, %cst_33 [2] : vector<4x8x8xf32> to vector<4x8xf32>
    %41 = vector.shape_cast %40 : vector<4x8xf32> to vector<4x8x1xf32>
    %42 = tpu.reciprocal %41 {approx = true} : vector<4x8x1xf32> -> vector<4x8x1xf32>
    %43 = vector.broadcast %42 : vector<4x8x1xf32> to vector<4x8x8xf32>
    %44 = arith.mulf %39, %43 : vector<4x8x8xf32>
    %45 = arith.truncf %44 : vector<4x8x8xf32> to vector<4x8x8xbf16>
    %46 = arith.truncf %28 : vector<4x8x8xf32> to vector<4x8x8xbf16>
    "tpu.trace_start"() <{level = 10 : i32, message = "hqk,hkd->hqd"}> : () -> ()
    %cst_34 = arith.constant dense<0.000000e+00> : vector<4x8x8xf32>
    %47 = tpu.matmul %45, %46, %cst_34 {dimension_numbers = #tpu.dot_dimension_numbers<[2], [1], [1], [2], [0, 0, 0, 1, 1, 2], [0], [0]>} : vector<4x8x8xbf16>, vector<4x8x8xbf16>, vector<4x8x8xf32> -> vector<4x8x8xf32>
    "tpu.trace_stop"() : () -> ()
    %48 = arith.truncf %47 : vector<4x8x8xf32> to vector<4x8x8xbf16>
    %c0_35 = arith.constant 0 : index
    %c0_36 = arith.constant 0 : index
    %c0_37 = arith.constant 0 : index
    %c0_38 = arith.constant 0 : index
    %49 = vector.load %arg12[%c0_35, %c0_36, %c0_37, %c0_38] : memref<1x4x8x32xbf16, #tpu.memory_space<vmem>>, vector<1x4x8x32xbf16>
    %50 = vector.shape_cast %49 : vector<1x4x8x32xbf16> to vector<4x8x32xbf16>
    "tpu.trace_start"() <{level = 10 : i32, message = "hqd,hde->hqe"}> : () -> ()
    %cst_39 = arith.constant dense<0.000000e+00> : vector<4x8x32xf32>
    %51 = tpu.matmul %48, %50, %cst_39 {dimension_numbers = #tpu.dot_dimension_numbers<[2], [1], [1], [2], [0, 0, 0, 1, 1, 2], [0], [0]>} : vector<4x8x8xbf16>, vector<4x8x32xbf16>, vector<4x8x32xf32> -> vector<4x8x32xf32>
    "tpu.trace_stop"() : () -> ()
    %cst_40 = arith.constant dense<0.000000e+00> : vector<8x32xf32>
    %52 = vector.multi_reduction <add>, %51, %cst_40 [0] : vector<4x8x32xf32> to vector<8x32xf32>
    %c0_41 = arith.constant 0 : index
    %c0_42 = arith.constant 0 : index
    %c0_43 = arith.constant 0 : index
    %53 = vector.load %arg13[%c0_41, %c0_42, %c0_43] : memref<1x1x32xf32, #tpu.memory_space<vmem>>, vector<1x1x32xf32>
    %54 = vector.shape_cast %53 : vector<1x1x32xf32> to vector<1x32xf32>
    %55 = vector.broadcast %54 : vector<1x32xf32> to vector<8x32xf32>
    %56 = arith.addf %52, %55 : vector<8x32xf32>
    %57 = arith.addf %56, %3 : vector<8x32xf32>
    %c0_44 = arith.constant 0 : index
    %c0_45 = arith.constant 0 : index
    %c0_46 = arith.constant 0 : index
    %58 = vector.load %arg14[%c0_44, %c0_45, %c0_46] : memref<1x1x32xf32, #tpu.memory_space<vmem>>, vector<1x1x32xf32>
    %59 = vector.shape_cast %58 : vector<1x1x32xf32> to vector<1x32xf32>
    %c0_47 = arith.constant 0 : index
    %c0_48 = arith.constant 0 : index
    %c0_49 = arith.constant 0 : index
    %60 = vector.load %arg15[%c0_47, %c0_48, %c0_49] : memref<1x1x32xf32, #tpu.memory_space<vmem>>, vector<1x1x32xf32>
    %61 = vector.shape_cast %60 : vector<1x1x32xf32> to vector<1x32xf32>
    %cst_50 = arith.constant dense<0.000000e+00> : vector<8xf32>
    %62 = vector.multi_reduction <add>, %57, %cst_50 [1] : vector<8x32xf32> to vector<8xf32>
    %63 = vector.shape_cast %62 : vector<8xf32> to vector<8x1xf32>
    %cst_51 = arith.constant 3.200000e+01 : f32
    %64 = vector.broadcast %cst_51 : f32 to vector<8x1xf32>
    %65 = arith.divf %63, %64 : vector<8x1xf32>
    %66 = vector.broadcast %65 : vector<8x1xf32> to vector<8x32xf32>
    %67 = arith.subf %57, %66 : vector<8x32xf32>
    %68 = arith.mulf %67, %67 : vector<8x32xf32>
    %cst_52 = arith.constant dense<0.000000e+00> : vector<8xf32>
    %69 = vector.multi_reduction <add>, %68, %cst_52 [1] : vector<8x32xf32> to vector<8xf32>
    %70 = vector.shape_cast %69 : vector<8xf32> to vector<8x1xf32>
    %cst_53 = arith.constant 3.200000e+01 : f32
    %71 = vector.broadcast %cst_53 : f32 to vector<8x1xf32>
    %72 = arith.divf %70, %71 : vector<8x1xf32>
    %73 = vector.broadcast %65 : vector<8x1xf32> to vector<8x32xf32>
    %74 = arith.subf %57, %73 : vector<8x32xf32>
    %cst_54 = arith.constant 9.99999996E-13 : f32
    %75 = vector.broadcast %cst_54 : f32 to vector<8x1xf32>
    %76 = arith.addf %72, %75 : vector<8x1xf32>
    %77 = math.rsqrt %76 : vector<8x1xf32>
    %78 = vector.broadcast %77 : vector<8x1xf32> to vector<8x32xf32>
    %79 = arith.mulf %74, %78 : vector<8x32xf32>
    %80 = vector.broadcast %59 : vector<1x32xf32> to vector<8x32xf32>
    %81 = arith.mulf %79, %80 : vector<8x32xf32>
    %82 = vector.broadcast %61 : vector<1x32xf32> to vector<8x32xf32>
    %83 = arith.addf %81, %82 : vector<8x32xf32>
    %84 = arith.truncf %83 : vector<8x32xf32> to vector<8x32xbf16>
    %c0_55 = arith.constant 0 : index
    %c0_56 = arith.constant 0 : index
    %c0_57 = arith.constant 0 : index
    %85 = vector.load %arg16[%c0_55, %c0_56, %c0_57] : memref<1x32x64xbf16, #tpu.memory_space<vmem>>, vector<1x32x64xbf16>
    %86 = vector.shape_cast %85 : vector<1x32x64xbf16> to vector<32x64xbf16>
    %cst_58 = arith.constant dense<0.000000e+00> : vector<8x64xf32>
    %87 = tpu.matmul %84, %86, %cst_58 {dimension_numbers = #tpu.dot_dimension_numbers<[1], [0], [0], [1], [0, 0, 1, 1], [], []>} : vector<8x32xbf16>, vector<32x64xbf16>, vector<8x64xf32> -> vector<8x64xf32>
    %c0_59 = arith.constant 0 : index
    %c0_60 = arith.constant 0 : index
    %c0_61 = arith.constant 0 : index
    %88 = vector.load %arg17[%c0_59, %c0_60, %c0_61] : memref<1x1x64xf32, #tpu.memory_space<vmem>>, vector<1x1x64xf32>
    %89 = vector.shape_cast %88 : vector<1x1x64xf32> to vector<1x64xf32>
    %90 = vector.broadcast %89 : vector<1x64xf32> to vector<8x64xf32>
    %91 = arith.addf %87, %90 : vector<8x64xf32>
    %cst_62 = arith.constant 5.000000e-01 : f32
    %92 = vector.broadcast %cst_62 : f32 to vector<8x64xf32>
    %93 = arith.mulf %92, %91 : vector<8x64xf32>
    %cst_63 = arith.constant 4.471500e-02 : f32
    %94 = vector.broadcast %cst_63 : f32 to vector<8x64xf32>
    %95 = arith.mulf %94, %91 : vector<8x64xf32>
    %96 = arith.mulf %95, %91 : vector<8x64xf32>
    %97 = arith.mulf %96, %91 : vector<8x64xf32>
    %98 = arith.addf %91, %97 : vector<8x64xf32>
    %cst_64 = arith.constant 0.797884583 : f32
    %99 = vector.broadcast %cst_64 : f32 to vector<8x64xf32>
    %100 = arith.mulf %99, %98 : vector<8x64xf32>
    %101 = math.tanh %100 : vector<8x64xf32>
    %cst_65 = arith.constant 1.000000e+00 : f32
    %102 = vector.broadcast %cst_65 : f32 to vector<8x64xf32>
    %103 = arith.addf %102, %101 : vector<8x64xf32>
    %104 = arith.mulf %93, %103 : vector<8x64xf32>
    %105 = arith.truncf %104 : vector<8x64xf32> to vector<8x64xbf16>
    %c0_66 = arith.constant 0 : index
    %c0_67 = arith.constant 0 : index
    %c0_68 = arith.constant 0 : index
    %106 = vector.load %arg18[%c0_66, %c0_67, %c0_68] : memref<1x64x32xbf16, #tpu.memory_space<vmem>>, vector<1x64x32xbf16>
    %107 = vector.shape_cast %106 : vector<1x64x32xbf16> to vector<64x32xbf16>
    %cst_69 = arith.constant dense<0.000000e+00> : vector<8x32xf32>
    %108 = tpu.matmul %105, %107, %cst_69 {dimension_numbers = #tpu.dot_dimension_numbers<[1], [0], [0], [1], [0, 0, 1, 1], [], []>} : vector<8x64xbf16>, vector<64x32xbf16>, vector<8x32xf32> -> vector<8x32xf32>
    %c0_70 = arith.constant 0 : index
    %c0_71 = arith.constant 0 : index
    %c0_72 = arith.constant 0 : index
    %109 = vector.load %arg19[%c0_70, %c0_71, %c0_72] : memref<1x1x32xf32, #tpu.memory_space<vmem>>, vector<1x1x32xf32>
    %110 = vector.shape_cast %109 : vector<1x1x32xf32> to vector<1x32xf32>
    %111 = vector.broadcast %110 : vector<1x32xf32> to vector<8x32xf32>
    %112 = arith.addf %108, %111 : vector<8x32xf32>
    %113 = arith.addf %112, %83 : vector<8x32xf32>
    %c0_73 = arith.constant 0 : index
    %c0_74 = arith.constant 0 : index
    %c0_75 = arith.constant 0 : index
    %114 = vector.load %arg20[%c0_73, %c0_74, %c0_75] : memref<1x1x32xf32, #tpu.memory_space<vmem>>, vector<1x1x32xf32>
    %115 = vector.shape_cast %114 : vector<1x1x32xf32> to vector<1x32xf32>
    %c0_76 = arith.constant 0 : index
    %c0_77 = arith.constant 0 : index
    %c0_78 = arith.constant 0 : index
    %116 = vector.load %arg21[%c0_76, %c0_77, %c0_78] : memref<1x1x32xf32, #tpu.memory_space<vmem>>, vector<1x1x32xf32>
    %117 = vector.shape_cast %116 : vector<1x1x32xf32> to vector<1x32xf32>
    %cst_79 = arith.constant dense<0.000000e+00> : vector<8xf32>
    %118 = vector.multi_reduction <add>, %113, %cst_79 [1] : vector<8x32xf32> to vector<8xf32>
    %119 = vector.shape_cast %118 : vector<8xf32> to vector<8x1xf32>
    %cst_80 = arith.constant 3.200000e+01 : f32
    %120 = vector.broadcast %cst_80 : f32 to vector<8x1xf32>
    %121 = arith.divf %119, %120 : vector<8x1xf32>
    %122 = vector.broadcast %121 : vector<8x1xf32> to vector<8x32xf32>
    %123 = arith.subf %113, %122 : vector<8x32xf32>
    %124 = arith.mulf %123, %123 : vector<8x32xf32>
    %cst_81 = arith.constant dense<0.000000e+00> : vector<8xf32>
    %125 = vector.multi_reduction <add>, %124, %cst_81 [1] : vector<8x32xf32> to vector<8xf32>
    %126 = vector.shape_cast %125 : vector<8xf32> to vector<8x1xf32>
    %cst_82 = arith.constant 3.200000e+01 : f32
    %127 = vector.broadcast %cst_82 : f32 to vector<8x1xf32>
    %128 = arith.divf %126, %127 : vector<8x1xf32>
    %129 = vector.broadcast %121 : vector<8x1xf32> to vector<8x32xf32>
    %130 = arith.subf %113, %129 : vector<8x32xf32>
    %cst_83 = arith.constant 9.99999996E-13 : f32
    %131 = vector.broadcast %cst_83 : f32 to vector<8x1xf32>
    %132 = arith.addf %128, %131 : vector<8x1xf32>
    %133 = math.rsqrt %132 : vector<8x1xf32>
    %134 = vector.broadcast %133 : vector<8x1xf32> to vector<8x32xf32>
    %135 = arith.mulf %130, %134 : vector<8x32xf32>
    %136 = vector.broadcast %115 : vector<1x32xf32> to vector<8x32xf32>
    %137 = arith.mulf %135, %136 : vector<8x32xf32>
    %138 = vector.broadcast %117 : vector<1x32xf32> to vector<8x32xf32>
    %139 = arith.addf %137, %138 : vector<8x32xf32>
    %c0_84 = arith.constant 0 : index
    %c0_85 = arith.constant 0 : index
    %140 = vector.load %arg27[%c0_84, %c0_85] : memref<8x32xf32, #tpu.memory_space<vmem>>, vector<8x32xf32>
    tpu.vector_store %arg27[%c0_84, %c0_85], %139 {strides = array<i32>} : memref<8x32xf32, #tpu.memory_space<vmem>>, vector<8x32xf32>,
    %c1_i32 = arith.constant 1 : i32
    %141 = arith.cmpi eq, %arg1, %c1_i32 : i32
    %142 = arith.extui %141 : i1 to i32
    %c0_i32_86 = arith.constant 0 : i32
    %143 = arith.cmpi ne, %142, %c0_i32_86 : i32
    scf.if %143 {
      %144 = vector.extract_strided_slice %139 {offsets = [0, 0], sizes = [1, 32], strides = [1, 1]} : vector<8x32xf32> to vector<1x32xf32>
      %145 = arith.truncf %144 : vector<1x32xf32> to vector<1x32xbf16>
      %c0_87 = arith.constant 0 : index
      %c0_88 = arith.constant 0 : index
      %146 = vector.load %arg22[%c0_87, %c0_88] : memref<32x32xbf16, #tpu.memory_space<vmem>>, vector<32x32xbf16>
      %cst_89 = arith.constant dense<0.000000e+00> : vector<1x32xf32>
      %147 = tpu.matmul %145, %146, %cst_89 {dimension_numbers = #tpu.dot_dimension_numbers<[1], [0], [0], [1], [0, 0, 1, 1], [], []>} : vector<1x32xbf16>, vector<32x32xbf16>, vector<1x32xf32> -> vector<1x32xf32>
      %c0_90 = arith.constant 0 : index
      %c0_91 = arith.constant 0 : index
      %148 = vector.load %arg23[%c0_90, %c0_91] : memref<1x32xf32, #tpu.memory_space<vmem>>, vector<1x32xf32>
      %149 = arith.addf %147, %148 : vector<1x32xf32>
      %150 = math.tanh %149 : vector<1x32xf32>
      %151 = arith.truncf %150 : vector<1x32xf32> to vector<1x32xbf16>
      %c0_92 = arith.constant 0 : index
      %c0_93 = arith.constant 0 : index
      %152 = vector.load %arg24[%c0_92, %c0_93] : memref<32x128xbf16, #tpu.memory_space<vmem>>, vector<32x128xbf16>
      %cst_94 = arith.constant dense<0.000000e+00> : vector<1x128xf32>
      %153 = tpu.matmul %151, %152, %cst_94 {dimension_numbers = #tpu.dot_dimension_numbers<[1], [0], [0], [1], [0, 0, 1, 1], [], []>} : vector<1x32xbf16>, vector<32x128xbf16>, vector<1x128xf32> -> vector<1x128xf32>
      %c0_95 = arith.constant 0 : index
      %c0_96 = arith.constant 0 : index
      %154 = vector.load %arg25[%c0_95, %c0_96] : memref<1x128xf32, #tpu.memory_space<vmem>>, vector<1x128xf32>
      %155 = arith.addf %153, %154 : vector<1x128xf32>
      %cst_97 = arith.constant 0.000000e+00 : f32
      %156 = vector.broadcast %cst_97 : f32 to vector<1x128xf32>
      %157 = arith.maximumf %155, %156 : vector<1x128xf32>
      %c0_98 = arith.constant 0 : index
      %c0_99 = arith.constant 0 : index
      %c0_100 = arith.constant 0 : index
      %158 = vector.load %arg26[%c0_98, %c0_99, %c0_100] : memref<1x1x128xf32, #tpu.memory_space<vmem>>, vector<1x1x128xf32>
      %159 = vector.shape_cast %158 : vector<1x1x128xf32> to vector<1x128xf32>
      %160 = vector.shape_cast %157 : vector<1x128xf32> to vector<1x1x128xf32>
      tpu.vector_store %arg26[%c0_98, %c0_99, %c0_100], %160 {strides = array<i32>} : memref<1x1x128xf32, #tpu.memory_space<vmem>>, vector<1x1x128xf32>,
    } else {
    }
    return
  }
  func.func @transform_0(%arg0: i32, %arg1: i32) -> (i32, i32) {
    %c0_i32 = arith.constant 0 : i32
    %c0_i32_0 = arith.constant 0 : i32
    return %arg0, %c0_i32 : i32, i32
  }
  func.func @transform_1(%arg0: i32, %arg1: i32) -> (i32, i32, i32) {
    %c0_i32 = arith.constant 0 : i32
    %c0_i32_0 = arith.constant 0 : i32
    %c0_i32_1 = arith.constant 0 : i32
    return %arg0, %c0_i32, %c0_i32_0 : i32, i32, i32
  }
  func.func @transform_2(%arg0: i32, %arg1: i32) -> (i32, i32) {
    %c0_i32 = arith.constant 0 : i32
    %c0_i32_0 = arith.constant 0 : i32
    %c0_i32_1 = arith.constant 0 : i32
    return %c0_i32, %c0_i32_0 : i32, i32
  }
  func.func @transform_3(%arg0: i32, %arg1: i32) -> (i32, i32) {
    %c0_i32 = arith.constant 0 : i32
    %c0_i32_0 = arith.constant 0 : i32
    %c0_i32_1 = arith.constant 0 : i32
    return %c0_i32, %c0_i32_0 : i32, i32
  }
  func.func @transform_4(%arg0: i32, %arg1: i32) -> (i32, i32, i32, i32) {
    %c0_i32 = arith.constant 0 : i32
    %c0_i32_0 = arith.constant 0 : i32
    %c0_i32_1 = arith.constant 0 : i32
    %c0_i32_2 = arith.constant 0 : i32
    return %arg1, %c0_i32, %c0_i32_0, %c0_i32_1 : i32, i32, i32, i32
  }
  func.func @transform_5(%arg0: i32, %arg1: i32) -> (i32, i32, i32, i32) {
    %c0_i32 = arith.constant 0 : i32
    %c0_i32_0 = arith.constant 0 : i32
    %c0_i32_1 = arith.constant 0 : i32
    %c0_i32_2 = arith.constant 0 : i32
    return %arg1, %c0_i32, %c0_i32_0, %c0_i32_1 : i32, i32, i32, i32
  }
  func.func @transform_6(%arg0: i32, %arg1: i32) -> (i32, i32, i32, i32) {
    %c0_i32 = arith.constant 0 : i32
    %c0_i32_0 = arith.constant 0 : i32
    %c0_i32_1 = arith.constant 0 : i32
    %c0_i32_2 = arith.constant 0 : i32
    return %arg1, %c0_i32, %c0_i32_0, %c0_i32_1 : i32, i32, i32, i32
  }
  func.func @transform_7(%arg0: i32, %arg1: i32) -> (i32, i32, i32, i32) {
    %c0_i32 = arith.constant 0 : i32
    %c0_i32_0 = arith.constant 0 : i32
    %c0_i32_1 = arith.constant 0 : i32
    %c0_i32_2 = arith.constant 0 : i32
    return %arg1, %c0_i32, %c0_i32_0, %c0_i32_1 : i32, i32, i32, i32
  }
  func.func @transform_8(%arg0: i32, %arg1: i32) -> (i32, i32, i32, i32) {
    %c0_i32 = arith.constant 0 : i32
    %c0_i32_0 = arith.constant 0 : i32
    %c0_i32_1 = arith.constant 0 : i32
    %c0_i32_2 = arith.constant 0 : i32
    return %arg1, %c0_i32, %c0_i32_0, %c0_i32_1 : i32, i32, i32, i32
  }
  func.func @transform_9(%arg0: i32, %arg1: i32) -> (i32, i32, i32, i32) {
    %c0_i32 = arith.constant 0 : i32
    %c0_i32_0 = arith.constant 0 : i32
    %c0_i32_1 = arith.constant 0 : i32
    %c0_i32_2 = arith.constant 0 : i32
    return %arg1, %c0_i32, %c0_i32_0, %c0_i32_1 : i32, i32, i32, i32
  }
  func.func @transform_10(%arg0: i32, %arg1: i32) -> (i32, i32, i32, i32) {
    %c0_i32 = arith.constant 0 : i32
    %c0_i32_0 = arith.constant 0 : i32
    %c0_i32_1 = arith.constant 0 : i32
    %c0_i32_2 = arith.constant 0 : i32
    return %arg1, %c0_i32, %c0_i32_0, %c0_i32_1 : i32, i32, i32, i32
  }
  func.func @transform_11(%arg0: i32, %arg1: i32) -> (i32, i32, i32) {
    %c0_i32 = arith.constant 0 : i32
    %c0_i32_0 = arith.constant 0 : i32
    %c0_i32_1 = arith.constant 0 : i32
    return %arg1, %c0_i32, %c0_i32_0 : i32, i32, i32
  }
  func.func @transform_12(%arg0: i32, %arg1: i32) -> (i32, i32, i32) {
    %c0_i32 = arith.constant 0 : i32
    %c0_i32_0 = arith.constant 0 : i32
    %c0_i32_1 = arith.constant 0 : i32
    return %arg1, %c0_i32, %c0_i32_0 : i32, i32, i32
  }
  func.func @transform_13(%arg0: i32, %arg1: i32) -> (i32, i32, i32) {
    %c0_i32 = arith.constant 0 : i32
    %c0_i32_0 = arith.constant 0 : i32
    %c0_i32_1 = arith.constant 0 : i32
    return %arg1, %c0_i32, %c0_i32_0 : i32, i32, i32
  }
  func.func @transform_14(%arg0: i32, %arg1: i32) -> (i32, i32, i32) {
    %c0_i32 = arith.constant 0 : i32
    %c0_i32_0 = arith.constant 0 : i32
    %c0_i32_1 = arith.constant 0 : i32
    return %arg1, %c0_i32, %c0_i32_0 : i32, i32, i32
  }
  func.func @transform_15(%arg0: i32, %arg1: i32) -> (i32, i32, i32) {
    %c0_i32 = arith.constant 0 : i32
    %c0_i32_0 = arith.constant 0 : i32
    %c0_i32_1 = arith.constant 0 : i32
    return %arg1, %c0_i32, %c0_i32_0 : i32, i32, i32
  }
  func.func @transform_16(%arg0: i32, %arg1: i32) -> (i32, i32, i32) {
    %c0_i32 = arith.constant 0 : i32
    %c0_i32_0 = arith.constant 0 : i32
    %c0_i32_1 = arith.constant 0 : i32
    return %arg1, %c0_i32, %c0_i32_0 : i32, i32, i32
  }
  func.func @transform_17(%arg0: i32, %arg1: i32) -> (i32, i32, i32) {
    %c0_i32 = arith.constant 0 : i32
    %c0_i32_0 = arith.constant 0 : i32
    %c0_i32_1 = arith.constant 0 : i32
    return %arg1, %c0_i32, %c0_i32_0 : i32, i32, i32
  }
  func.func @transform_18(%arg0: i32, %arg1: i32) -> (i32, i32, i32) {
    %c0_i32 = arith.constant 0 : i32
    %c0_i32_0 = arith.constant 0 : i32
    %c0_i32_1 = arith.constant 0 : i32
    return %arg1, %c0_i32, %c0_i32_0 : i32, i32, i32
  }
  func.func @transform_19(%arg0: i32, %arg1: i32) -> (i32, i32, i32) {
    %c0_i32 = arith.constant 0 : i32
    %c0_i32_0 = arith.constant 0 : i32
    %c0_i32_1 = arith.constant 0 : i32
    return %arg1, %c0_i32, %c0_i32_0 : i32, i32, i32
  }
  func.func @transform_20(%arg0: i32, %arg1: i32) -> (i32, i32) {
    %c0_i32 = arith.constant 0 : i32
    %c0_i32_0 = arith.constant 0 : i32
    %c0_i32_1 = arith.constant 0 : i32
    return %c0_i32, %c0_i32_0 : i32, i32
  }
  func.func @transform_21(%arg0: i32, %arg1: i32) -> (i32, i32) {
    %c0_i32 = arith.constant 0 : i32
    %c0_i32_0 = arith.constant 0 : i32
    %c0_i32_1 = arith.constant 0 : i32
    return %c0_i32, %c0_i32_0 : i32, i32
  }
  func.func @transform_22(%arg0: i32, %arg1: i32) -> (i32, i32) {
    %c0_i32 = arith.constant 0 : i32
    %c0_i32_0 = arith.constant 0 : i32
    %c0_i32_1 = arith.constant 0 : i32
    return %c0_i32, %c0_i32_0 : i32, i32
  }
  func.func @transform_23(%arg0: i32, %arg1: i32) -> (i32, i32) {
    %c0_i32 = arith.constant 0 : i32
    %c0_i32_0 = arith.constant 0 : i32
    %c0_i32_1 = arith.constant 0 : i32
    return %c0_i32, %c0_i32_0 : i32, i32
  }
  func.func @transform_24(%arg0: i32, %arg1: i32) -> (i32, i32, i32) {
    %c0_i32 = arith.constant 0 : i32
    %c0_i32_0 = arith.constant 0 : i32
    %c0_i32_1 = arith.constant 0 : i32
    return %arg0, %c0_i32, %c0_i32_0 : i32, i32, i32
  }
}

</mosaic_0001>

<bundles_post_ra>
// kernel: bert_classifier_forward.1
= control target key start
LH: loop header
LB: loop body
LE: loop exit
PB: predicated region body
PF: predicated region fallthrough
CT: control target
= control target key end

     0   :  { %s4339_s0 = inlined_call_operand.vmem [shape: f32[16,32], index: 0, kind: input, shape index: {}]   ;;  %s4340_s1 = inlined_call_operand.vmem [shape: f32[2,1,8], index: 1, kind: input, shape index: {}]   ;;  %s4341_s2 = inlined_call_operand.vmem [shape: f32[1,32], index: 2, kind: input, shape index: {}]   ;;  %s4342_s3 = inlined_call_operand.vmem [shape: f32[1,32], index: 3, kind: input, shape index: {}]   ;;  %s4343_s4 = inlined_call_operand.vmem [shape: bf16[2,4,32,8], index: 4, kind: input, shape index: {}]   ;;  %s4344_s5 = inlined_call_operand.vmem [shape: f32[2,4,1,8], index: 5, kind: input, shape index: {}]   ;;  %s4345_s6 = inlined_call_operand.vmem [shape: bf16[2,4,32,8], index: 6, kind: input, shape index: {}]   ;;  %s4346_s7 = inlined_call_operand.vmem [shape: f32[2,4,1,8], index: 7, kind: input, shape index: {}]   ;;  %s4347_s8 = inlined_call_operand.vmem [shape: bf16[2,4,32,8], index: 8, kind: input, shape index: {}]   ;;  %s4348_s9 = inlined_call_operand.vmem [shape: f32[2,4,1,8], index: 9, kind: input, shape index: {}]   ;;  %s4349_s10 = inlined_call_operand.vmem [shape: bf16[2,4,8,32], index: 10, kind: input, shape index: {}]   ;;  %s4350_s11 = inlined_call_operand.vmem [shape: f32[2,1,32], index: 11, kind: input, shape index: {}]   ;;  %s4351_s12 = inlined_call_operand.vmem [shape: f32[2,1,32], index: 12, kind: input, shape index: {}]   ;;  %s4352_s13 = inlined_call_operand.vmem [shape: f32[2,1,32], index: 13, kind: input, shape index: {}]   ;;  %s4353_s14 = inlined_call_operand.vmem [shape: bf16[2,32,64], index: 14, kind: input, shape index: {}]   ;;  %s4354_s15 = inlined_call_operand.vmem [shape: f32[2,1,64], index: 15, kind: input, shape index: {}]   ;;  %s4355_s16 = inlined_call_operand.vmem [shape: bf16[2,64,32], index: 16, kind: input, shape index: {}]   ;;  %s4356_s17 = inlined_call_operand.vmem [shape: f32[2,1,32], index: 17, kind: input, shape index: {}]   ;;  %s4357_s18 = inlined_call_operand.vmem [shape: f32[2,1,32], index: 18, kind: input, shape index: {}]   ;;  %s4358_s19 = inlined_call_operand.vmem [shape: f32[2,1,32], index: 19, kind: input, shape index: {}]   ;;  %s4359_s20 = inlined_call_operand.vmem [shape: bf16[32,32], index: 20, kind: input, shape index: {}]   ;;  %s4360_s21 = inlined_call_operand.vmem [shape: f32[1,32], index: 21, kind: input, shape index: {}]   ;;  %s4361_s22 = inlined_call_operand.vmem [shape: bf16[32,128], index: 22, kind: input, shape index: {}]   ;;  %s4362_s23 = inlined_call_operand.vmem [shape: f32[1,128], index: 23, kind: input, shape index: {}]   ;;  %s4363_s24 = inlined_call_operand.hbm [shape: f32[2,1,128], index: 24, kind: output, shape index: {}]  }
   0x1   :  { %4384 = sst [smem:[#allocation23_spill]] %s4339_s0 }
   0x2   :  { %4385 = sst [smem:[#allocation24_spill]] %s4340_s1 }
   0x3   :  { %4386 = sst [smem:[#allocation25_spill]] %s4341_s2 }
   0x4   :  { %4387 = sst [smem:[#allocation26_spill]] %s4342_s3 }
   0x5   :  { %4388 = sst [smem:[#allocation27_spill]] %s4343_s4 }
   0x6   :  { %4389 = sst [smem:[#allocation28_spill]] %s4344_s5 }
   0x7   :  { %4390 = sst [smem:[#allocation29_spill]] %s4345_s6 }
   0x8   :  { %4391 = sst [smem:[#allocation30_spill]] %s4346_s7 }
   0x9   :  { %4392 = sst [smem:[#allocation31_spill]] %s4347_s8 }
   0xa   :  { %4393 = sst [smem:[#allocation32_spill]] %s4348_s9 }
   0xb   :  { %4394 = sst [smem:[#allocation33_spill]] %s4349_s10 }
   0xc   :  { %4395 = sst [smem:[#allocation34_spill]] %s4353_s14 }
   0xd   :  { %4396 = sst [smem:[#allocation35_spill]] %s4358_s19 }
   0xe   :  { %4397 = sst [smem:[#allocation36_spill]] %s4359_s20 }
   0xf   :  { %4398 = sst [smem:[#allocation37_spill]] %s4360_s21 }
  0x10   :  { %4399 = sst [smem:[#allocation38_spill]] %s4361_s22 }
  0x11   :  { %4400 = sst [smem:[#allocation39_spill]] %s4362_s23 }
  0x12   :  { %4401 = sst [smem:[#allocation40_spill]] %s4363_s24 }
  0x13   :  { %29 = vsyncpa [#allocation4], 0 }
  0x14   :  { %31 = vsyncpa [#allocation4 + $0x1], 0  ;;  %s3834_s5 = smov 0   ;;  %s3836_s26 = smov 0  }
  0x15   :  { %s3838_s27 = smov 0   ;;  %s3840_s28 = smov 0  }
  0x16   :  { %s3842_s6 = smov 0   ;;  %s3844_s2 = smov 0  }
  0x17   :  { %s3846_s29 = smov 0   ;;  %s3848_s0 = smov 0  }
  0x18 LB: > { %4402 = sst [smem:[#allocation6_spill]] %s3674_s5  ;;  %s3081_s7 = sadd.s32 4294967295, %s3702_s0   ;;  %s3702_s0 = sphi %s3848_s0, %s37_s0   ;;  %s3698_s29 = sphi %s3846_s29, %s4465_s29   ;;  %s3694_s2 = sphi %s3844_s2, %s4464_s2   ;;  %s3690_s6 = sphi %s3842_s6, %s4463_s6   ;;  %s3686_s28 = sphi %s3840_s28, %s4462_s28   ;;  %s3682_s27 = sphi %s3838_s27, %s4461_s27   ;;  %s3678_s26 = sphi %s3836_s26, %s4467_s26   ;;  %s3674_s5 = sphi %s3834_s5, %s4466_s5  }
  0x19   : > { %4403 = sst [smem:[#allocation7_spill]] %s3682_s27  ;;  %s3082_s30 = sadd.s32 4294967294, %s3702_s0  }
  0x1a   : > { %4404 = sst [smem:[#allocation8_spill]] %s3686_s28  ;;  %s46_s3 = sadd.s32 1, %s3694_s2 }
  0x1b   : > { %4405 = sst [smem:[#allocation9_spill]] %s3690_s6  ;;  %p47_p0 = scmp.ge.s32.totalorder %s46_s3, 2 }
  0x1c   : > { %4406 = sst [smem:[#allocation10_spill]] %s3694_s2  ;;  %s49_s25 = sadd.s32 1, %s3698_s29 }
  0x1d   : > { %4407 = sst [smem:[#allocation11_spill]] %s3698_s29  ;;  %p660_p1 = scmp.ne.s32.totalorder %s3682_s27, %s3678_s26 }
  0x1e   : > { %4408 = sst [smem:[#allocation12_spill]] %s3702_s0  ;;  %p661_p2 = scmp.eq.s32.totalorder %s3081_s7, 3 }
  0x1f   : > { %s4469_s3 = smov (%p47_p0, %s46_s3), 0  ;;  %s4471_s25 = smov (!%p47_p0, %s49_s25), %s3698_s29 }
  0x20   : > { %4409 = sst [smem:[#allocation13_spill]] %s4469_s3  ;;  %p3883_p3 = por %p661_p2, %p660_p1 }
  0x21   : > { %p666_p4 = scmp.ne.s32.totalorder %s3678_s26, %s3674_s5  ;;  %p51_p5 = scmp.ge.s32.totalorder %s4471_s25, 2 }
  0x22   : > { %s4410_s8 = scalar_select %p3883_p3, 1, 0 }
  0x23   : > { %p667_p6 = scmp.eq.s32.totalorder %s3082_s30, 3  ;;  %p3085_p7 = scmp.ge.s32.totalorder %s3702_s0, 1 }
  0x24   : > { %4411 = sst [smem:[#allocation14_spill]] %s4410_s8  ;;  %p827_p8 = scmp.lt.s32.totalorder %s3702_s0, 5 }
  0x25   : > { %s4473_s25 = smov (%p51_p5, %s4471_s25), 0  ;;  %p3893_p9 = por %p667_p6, %p666_p4 }
  0x26   : > { %4412 = sst [smem:[#allocation15_spill]] %s4473_s25  ;;  %p828_p10 = pnand %p3085_p7, %p827_p8 }
  0x27   : > { %s4413_s4 = scalar_select %p3893_p9, 1, 0 }
  0x28   : > { %s647_s1 = ssub.s32 %s3698_s29, %s4473_s25  ;;  %s650_s7 = sadd.s32 1, %s3682_s27 }
  0x29   : > { %4414 = sst [smem:[#allocation16_spill]] %s4413_s4  ;;  %p648_p11 = scmp.eq.s32.totalorder %s647_s1, 0 }
  0x2a   : > { %831 = sbr.rel (%p828_p10) target bundleno = 3027 (0xbd3), region = 116 }
  0x2b   : > { %s3901_s3 = scalar_select %p648_p11, %s3682_s27, %s650_s7  }
  0x2d   : > { %4415 = sst [smem:[#allocation17_spill]] %s3901_s3 }
  0x2f   : > { %p957_p12 = scmp.lt.s32.totalorder %s3690_s6, 1  ;;  %p964_p13 = scmp.lt.s32.totalorder %s3686_s28, 1 }
  0x30   : > { %s4418_s5 = sld [smem:[#allocation23_spill]]  ;;  %s4432_s7 = sand.u32 1, %s3678_s26  }
  0x31   : > { %s3907_s2 = scalar_select %p957_p12, %s3690_s6, 1 }
  0x32   : > { %s3910_s4 = scalar_select %p964_p13, %s3686_s28, 1 }
  0x33   : > { %4416 = sst [smem:[#allocation18_spill]] %s3907_s2  ;;  %s3086_s1 = sshll.u32 %s3907_s2, 3 }
  0x34   : > { %s3191_s24 = sshll.u32 %s3910_s4, 6  ;;  %s4419_s23 = sld [smem:[#allocation27_spill]] }
  0x35   : > { %s3089_s22 = sshll.u32 %s3910_s4, 2  ;;  %s4421_s19 = sld [smem:[#allocation28_spill]] }
  0x36   : > { %s960_s0 = scalar_lea.vmem %s4418_s5, %s3086_s1  ;;  %s4423_s27 = sld [smem:[#allocation29_spill]] }
  0x37   : > { %s4425_s3 = sld [smem:[#allocation30_spill]]  ;;  %s3194_s29 = sshll.u32 %s3910_s4, 4 }
  0x38   : > { %s4427_s2 = sld [smem:[#allocation31_spill]] }
  0x39   : > { %s4428_s9 = sld [smem:[#allocation32_spill]] }
  0x3a   : > { %s3924_s21 = scalar_lea.vmem %s4419_s23, %s3191_s24  ;;  %s4429_s10 = sld [smem:[#allocation33_spill]] }
  0x3b   : > { %4420 = sst [smem:[#allocation19_spill]] %s3924_s21  ;;  %s3930_s25 = scalar_lea.vmem %s4421_s19, %s3089_s22 }
  0x3c   : > { %4422 = sst [smem:[#allocation20_spill]] %s3930_s25  ;;  %s3935_s5 = scalar_lea.vmem %s4423_s27, %s3191_s24 }
  0x3d   : > { %4424 = sst [smem:[#allocation21_spill]] %s3935_s5  ;;  %s3940_s6 = scalar_lea.vmem %s4425_s3, %s3089_s22 }
  0x3e   : > { %4426 = sst [smem:[#allocation22_spill]] %s3940_s6  ;;  %s3945_s21 = scalar_lea.vmem %s4427_s2, %s3191_s24 }
  0x3f   : > { %s3950_s28 = scalar_lea.vmem %s4428_s9, %s3089_s22  ;;  %s4430_s14 = sld [smem:[#allocation34_spill]] }
  0x40   : > { %s3956_s25 = scalar_lea.vmem %s4429_s10, %s3194_s29  ;;  %s3196_s10 = sshll.u32 %s3910_s4, 5 }
  0x41   : > { %s1020_s3 = scalar_lea.vmem %s4356_s17, %s3910_s4  ;;  %s3987_s24 = scalar_lea.vmem %s4355_s16, %s3196_s10 }
  0x42   : > { %s1023_s22 = scalar_lea.vmem %s4357_s18, %s3910_s4  ;;  %s4431_s8 = sld [smem:[#allocation35_spill]] }
  0x43   : > { %s3999_s27 = scalar_lea.vmem [#allocation3], %s4432_s7  ;;  %s4433_s9 = sld [smem:[#allocation8_spill]] }
  0x45   : > { %s3973_s19 = scalar_lea.vmem %s4430_s14, %s3194_s29 }
  0x48   : > { %s1026_s14 = scalar_lea.vmem %s4431_s8, %s3910_s4 }
  0x49   : > { %p3102_p0 = scmp.ne.s32.totalorder %s4433_s9, 0 }
  0x4a   : > { %s4434_s8 = sld [smem:[#allocation25_spill]] (!%p3102_p0) }
  0x4b   : > { %1031 = sbr.rel (%p3102_p0) target bundleno = 390 (0x186), region = 120  ;;  %s4435_s1 = sld [smem:[#allocation26_spill]] (!%p3102_p0) }
  0x50   : > { %v1032_v0 = vld [vmem:[%s960_s0] sm:$0xff]  ;;  %vm1035_vm0 = vcmask 261120  }
  0x51   : > { %v1036_v1 = vsel %vm1035_vm0, %v1032_v0, 0.0  ;;  %v3103_v11 = vld [vmem:[%s4434_s8] ss:$0 sm:$0xff] }
  0x52   : > { %1037 = vadd.xlane.f32.xlu0 %v1036_v1  ;;  %v3104_v13 = vld [vmem:[%s4435_s1] ss:$0 sm:$0xff] }
  0xdb   : > { %v1038_v2 = vpop.xlane.xlu0 %1037 }
  0xdc   : > { %v1040_v3 = vmul.f32 0.03125, %v1038_v2 }
  0xde   : > { %v1041_v4 = vsub.f32 %v1032_v0, %v1040_v3 }
  0xe0   : > { %v1042_v5 = vmul.f32 %v1041_v4, %v1041_v4 }
  0xe2   : > { %v1043_v6 = vsel %vm1035_vm0, %v1042_v5, 0.0 }
  0xe3   : > { %1044 = vadd.xlane.f32.xlu0 %v1043_v6 }
 0x16c   : > { %v1045_v7 = vpop.xlane.xlu0 %1044 }
 0x16d   : > { %v1046_v8 = vmul.f32 0.03125, %v1045_v7 }
 0x16f   : > { %v1047_v9 = vadd.f32 1e-12, %v1046_v8 }
 0x171   : > { %3550 = vrsqrt.f32 %v1047_v9 }
 0x17e   : > { %v3551_v10 = vpop.eup %3550 }
 0x17f   : > { %v1049_v12 = vmul.f32 %v3551_v10, %v1041_v4 }
 0x181   : > { %v1056_v14 = vmul.f32 %v3103_v11, %v1049_v12 }
 0x183   : > { %v1063_v15 = vadd.f32 %v3104_v13, %v1056_v14 }
 0x185   : > { %1064 = vst.msk [vmem:[#allocation2] sm:$0xff] %vm1035_vm0, %v1063_v15 }
 0x186 PF: > { %s4436_s5 = sld [smem:[#allocation19_spill]]  ;;  %v3704_v17 = vmov 0.0   ;;  %vm3705_vm1 = vmmov 0   ;;  %vm1123_vm2 = vcmask 261120   ;;  %v3568_v35 = vld [vmem:[%s3945_s21 + $0x8] sm:$0xff]   ;;  %v3569_v36 = vld [vmem:[%s3945_s21] sm:$0xff]   ;;  %s4443_s9 = scalar_lea.vmem %s4350_s11, %s3910_s4 }
 0x187   : > { %3271 = vmatprep.subr.bf16.mxu0 %v3704_v17  ;;  %3279 = vmatprep.subr.bf16.mxu1 %v3704_v17  ;;  %s4437_s6 = sld [smem:[#allocation21_spill]]  ;;  %v3570_v37 = vld [vmem:[%s3945_s21 + $0x18] sm:$0xff]   ;;  %v3571_v38 = vld [vmem:[%s3945_s21 + $0x10] sm:$0xff]   ;;  %v3572_v39 = vld [vmem:[%s3945_s21 + $0x28] sm:$0xff]   ;;  %vm1842_vm3 = vcmask 64512   ;;  %vm2082_vm4 = vcmask 1043456   ;;  %s4444_s30 = scalar_lea.vmem %s4351_s12, %s3910_s4 }
 0x188   : > { %3275 = vmatprep.mubr.msk.bf16.mxu0 %vm3705_vm1, %v3704_v17  ;;  %3283 = vmatprep.mubr.msk.bf16.mxu1 %vm3705_vm1, %v3704_v17  ;;  %v3573_v40 = vld [vmem:[%s3945_s21 + $0x20] sm:$0xff]   ;;  %v3574_v41 = vld [vmem:[%s3945_s21 + $0x38] sm:$0xff]   ;;  %v3575_v42 = vld [vmem:[%s3945_s21 + $0x30] sm:$0xff]   ;;  %s4438_s2 = sld [smem:[#allocation22_spill]]  ;;  %vm2618_vm5 = vcmask 523264  }
 0x189   : > { %s4439_s21 = sld [smem:[#allocation20_spill]] }
 0x18a   : > { %s4440_s23 = sld [smem:[#allocation18_spill]] }
 0x18b   : > { %s4441_s7 = sld [smem:[#allocation24_spill]] }
 0x18c   : > { %v3552_v16 = vld [vmem:[%s4436_s5 + $0x8] sm:$0xff]   ;;  %v3553_v18 = vld [vmem:[%s4436_s5 + $0x18] sm:$0xff]   ;;  %v3554_v19 = vld [vmem:[%s4436_s5] sm:$0xff]  }
 0x18d   : > { %3272 = vmatpush3.bf16.msra.mxu0 %v3552_v16  ;;  %3280 = vmatpush3.bf16.msra.mxu1 %v3553_v18  ;;  %v3555_v20 = vld [vmem:[%s4436_s5 + $0x10] sm:$0xff]   ;;  %v4023_v21 = vld [vmem:[#allocation2] sm:$0xff]  ;;  %v3556_v23 = vld [vmem:[%s4436_s5 + $0x28] sm:$0xff]  }
 0x18e   : > { %3273 = vmatprep.subr.bf16.mxu0 %v3704_v17  ;;  %3281 = vmatprep.subr.bf16.mxu1 %v3704_v17  ;;  %v4027_v22 = vpack.c.bf16 %v4023_v21, %v4023_v21  ;;  %v3557_v24 = vld [vmem:[%s4436_s5 + $0x38] sm:$0xff]   ;;  %v3558_v25 = vld [vmem:[%s4436_s5 + $0x20] sm:$0xff]   ;;  %v3559_v26 = vld [vmem:[%s4436_s5 + $0x30] sm:$0xff]  }
 0x18f   : > { %v3560_v27 = vld [vmem:[%s4437_s6 + $0x8] sm:$0xff]   ;;  %v3561_v28 = vld [vmem:[%s4437_s6 + $0x18] sm:$0xff]   ;;  %v3562_v29 = vld [vmem:[%s4437_s6] sm:$0xff]  }
 0x190   : > { %v3563_v30 = vld [vmem:[%s4437_s6 + $0x10] sm:$0xff]   ;;  %v3564_v31 = vld [vmem:[%s4437_s6 + $0x28] sm:$0xff]   ;;  %v3565_v32 = vld [vmem:[%s4437_s6 + $0x38] sm:$0xff]  }
 0x191   : > { %3274 = vmatpush3.bf16.msra.mxu0 %v3554_v19  ;;  %3282 = vmatpush3.bf16.msra.mxu1 %v3555_v20  ;;  %v3566_v33 = vld [vmem:[%s4437_s6 + $0x20] sm:$0xff]   ;;  %v3567_v34 = vld [vmem:[%s4437_s6 + $0x30] sm:$0xff]   ;;  %s4442_s10 = scalar_lea.vmem %s4441_s7, %s4440_s23 }
 0x192   : > { %3287 = vmatprep.subr.bf16.mxu0 %v3704_v17  ;;  %3295 = vmatprep.subr.bf16.mxu1 %v3704_v17  ;;  %v3121_v58 = vld [vmem:[%s4438_s2] ss:$0 sm:$0xff]  ;;  %v3122_v60 = vld [vmem:[%s4438_s2 + $0x1] ss:$0 sm:$0xff]  ;;  %v3123_v12 = vld [vmem:[%s4438_s2 + $0x2] ss:$0 sm:$0xff] }
 0x193   : > { %v3105_v4 = vld [vmem:[%s4439_s21] ss:$0 sm:$0xff]  ;;  %v3106_v7 = vld [vmem:[%s4439_s21 + $0x1] ss:$0 sm:$0xff]  ;;  %v3124_v15 = vld [vmem:[%s4438_s2 + $0x3] ss:$0 sm:$0xff] }
 0x194   : > { %3276 = vmatmul.mubr.msk.bf16.vlgmr.msra.gmra.mxu0 %vm1123_vm2, %v4027_v22  ;;  %3284 = vmatmul.mubr.msk.bf16.vlgmr.msra.gmra.mxu1 %vm1123_vm2, %v4027_v22 }
 0x195   : > { %3288 = vmatpush3.bf16.msra.mxu0 %v3556_v23  ;;  %3296 = vmatpush3.bf16.msra.mxu1 %v3557_v24 }
 0x196   : > { %3289 = vmatprep.subr.bf16.mxu0 %v3704_v17  ;;  %3297 = vmatprep.subr.bf16.mxu1 %v3704_v17 }
 0x197   : > { %3291 = vmatprep.mubr.msk.bf16.mxu0 %vm3705_vm1, %v3704_v17  ;;  %3299 = vmatprep.mubr.msk.bf16.mxu1 %vm3705_vm1, %v3704_v17 }
 0x199   : > { %3290 = vmatpush3.bf16.msra.mxu0 %v3558_v25  ;;  %3298 = vmatpush3.bf16.msra.mxu1 %v3559_v26 }
 0x19a   : > { %3303 = vmatprep.subr.bf16.mxu0 %v3704_v17  ;;  %3311 = vmatprep.subr.bf16.mxu1 %v3704_v17 }
 0x19c   : > { %3292 = vmatmul.mubr.msk.bf16.vlgmr.msra.gmra.mxu0 %vm1123_vm2, %v4027_v22  ;;  %3300 = vmatmul.mubr.msk.bf16.vlgmr.msra.gmra.mxu1 %vm1123_vm2, %v4027_v22 }
 0x19d   : > { %3304 = vmatpush3.bf16.msra.mxu0 %v3560_v27  ;;  %3312 = vmatpush3.bf16.msra.mxu1 %v3561_v28  ;;  %v3107_v28 = vld [vmem:[%s4439_s21 + $0x2] ss:$0 sm:$0xff] }
 0x19e   : > { %3305 = vmatprep.subr.bf16.mxu0 %v3704_v17  ;;  %3313 = vmatprep.subr.bf16.mxu1 %v3704_v17 }
 0x19f   : > { %3307 = vmatprep.mubr.msk.bf16.mxu0 %vm3705_vm1, %v3704_v17  ;;  %3315 = vmatprep.mubr.msk.bf16.mxu1 %vm3705_vm1, %v3704_v17 }
 0x1a1   : > { %3306 = vmatpush3.bf16.msra.mxu0 %v3562_v29  ;;  %3314 = vmatpush3.bf16.msra.mxu1 %v3563_v30 }
 0x1a2   : > { %3319 = vmatprep.subr.bf16.mxu0 %v3704_v17  ;;  %3327 = vmatprep.subr.bf16.mxu1 %v3704_v17 }
 0x1a4   : > { %3308 = vmatmul.mubr.msk.bf16.vlgmr.msra.gmra.mxu0 %vm1123_vm2, %v4027_v22  ;;  %3316 = vmatmul.mubr.msk.bf16.vlgmr.msra.gmra.mxu1 %vm1123_vm2, %v4027_v22 }
 0x1a5   : > { %3320 = vmatpush3.bf16.msra.mxu0 %v3564_v31  ;;  %3328 = vmatpush3.bf16.msra.mxu1 %v3565_v32  ;;  %v3108_v31 = vld [vmem:[%s4439_s21 + $0x3] ss:$0 sm:$0xff]  ;;  %s4446_s21 = scalar_lea.vmem %s4354_s15, %s3910_s4 }
 0x1a6   : > { %3321 = vmatprep.subr.bf16.mxu0 %v3704_v17  ;;  %3329 = vmatprep.subr.bf16.mxu1 %v3704_v17 }
 0x1a7   : > { %3323 = vmatprep.mubr.msk.bf16.mxu0 %vm3705_vm1, %v3704_v17  ;;  %3331 = vmatprep.mubr.msk.bf16.mxu1 %vm3705_vm1, %v3704_v17 }
 0x1a9   : > { %3322 = vmatpush3.bf16.msra.mxu0 %v3566_v33  ;;  %3330 = vmatpush3.bf16.msra.mxu1 %v3567_v34 }
 0x1aa   : > { %3335 = vmatprep.subr.bf16.mxu0 %v3704_v17  ;;  %3343 = vmatprep.subr.bf16.mxu1 %v3704_v17 }
 0x1ac   : > { %3324 = vmatmul.mubr.msk.bf16.vlgmr.msra.gmra.mxu0 %vm1123_vm2, %v4027_v22  ;;  %3332 = vmatmul.mubr.msk.bf16.vlgmr.msra.gmra.mxu1 %vm1123_vm2, %v4027_v22 }
 0x1ad   : > { %3339 = vmatprep.mubr.msk.bf16.mxu0 %vm3705_vm1, %v3704_v17  ;;  %3347 = vmatprep.mubr.msk.bf16.mxu1 %vm3705_vm1, %v3704_v17 }
 0x1ae   : > { %3336 = vmatpush3.bf16.msra.mxu0 %v3568_v35  ;;  %3344 = vmatpush3.bf16.msra.mxu1 %v3570_v37 }
 0x1af   : > { %3337 = vmatprep.subr.bf16.mxu0 %v3704_v17  ;;  %3345 = vmatprep.subr.bf16.mxu1 %v3704_v17 }
 0x1b2   : > { %3338 = vmatpush3.bf16.msra.mxu0 %v3569_v36  ;;  %3346 = vmatpush3.bf16.msra.mxu1 %v3571_v38 }
 0x1b3   : > { %3351 = vmatprep.subr.bf16.mxu0 %v3704_v17  ;;  %3359 = vmatprep.subr.bf16.mxu1 %v3704_v17 }
 0x1b5   : > { %3340 = vmatmul.mubr.msk.bf16.vlgmr.msra.gmra.mxu0 %vm1123_vm2, %v4027_v22  ;;  %3348 = vmatmul.mubr.msk.bf16.vlgmr.msra.gmra.mxu1 %vm1123_vm2, %v4027_v22 }
 0x1b6   : > { %3352 = vmatpush3.bf16.msra.mxu0 %v3572_v39  ;;  %3355 = vmatprep.mubr.msk.bf16.mxu0 %vm3705_vm1, %v3704_v17 }
 0x1b7   : > { %3353 = vmatprep.subr.bf16.mxu0 %v3704_v17  ;;  %3360 = vmatpush3.bf16.msra.mxu1 %v3574_v41  ;;  %v3137_v41 = vld [vmem:[%s3950_s28] ss:$0 sm:$0xff] }
 0x1b8   : > { %3361 = vmatprep.subr.bf16.mxu1 %v3704_v17  ;;  %3363 = vmatprep.mubr.msk.bf16.mxu1 %vm3705_vm1, %v3704_v17 }
 0x1ba   : > { %3354 = vmatpush3.bf16.msra.mxu0 %v3573_v40 }
 0x1bb   : > { %3367 = vmatprep.subr.bf16.mxu0 %v3704_v17  ;;  %3362 = vmatpush3.bf16.msra.mxu1 %v3575_v42 }
 0x1bc   : > { %3373 = vmatprep.subr.bf16.mxu1 %v3704_v17 }
 0x1bd   : > { %3356 = vmatmul.mubr.msk.bf16.vlgmr.msra.gmra.mxu0 %vm1123_vm2, %v4027_v22 }
 0x1be   : > { %3369 = vmatprep.mubr.msk.bf16.mxu0 %vm3705_vm1, %v3704_v17  ;;  %3364 = vmatmul.mubr.msk.bf16.vlgmr.msra.gmra.mxu1 %vm1123_vm2, %v4027_v22 }
 0x1bf   : > { %3375 = vmatprep.mubr.msk.bf16.mxu1 %vm3705_vm1, %v3704_v17 }
 0x254   : > { %v1161_v43 = vpop.f32.mrf.mxu0  ;;  %v1213_v44 = vpop.f32.mrf.mxu1 }
 0x255   : > { %v1162_v13 = vadd.f32 %v3105_v4, %v1161_v43  ;;  %v1214_v16 = vadd.f32 %v3106_v7, %v1213_v44 }
 0x256   : > { %v3277_v45 = vpop.f32.mrf.mxu0  ;;  %v3285_v46 = vpop.f32.mrf.mxu1 }
 0x257   : > { %v1827_v24 = vpack.c.bf16 %v1162_v13, %v1162_v13  ;;  %v1828_v27 = vpack.c.bf16 %v1214_v16, %v1214_v16  ;;  %v3138_v45 = vld [vmem:[%s3950_s28 + $0x1] ss:$0 sm:$0xff] }
 0x258   : > { %v1164_v47 = vpop.f32.mrf.mxu0  ;;  %v1216_v48 = vpop.f32.mrf.mxu1 }
 0x25a   : > { %v3278_v49 = vpop.f32.mrf.mxu0  ;;  %v3286_v50 = vpop.f32.mrf.mxu1 }
 0x25c   : > { %v1265_v51 = vpop.f32.mrf.mxu0  ;;  %v1317_v52 = vpop.f32.mrf.mxu1 }
 0x25d   : > { %v1266_v36 = vadd.f32 %v3107_v28, %v1265_v51  ;;  %v1318_v38 = vadd.f32 %v3108_v31, %v1317_v52 }
 0x25e   : > { %v3293_v53 = vpop.f32.mrf.mxu0  ;;  %v3301_v54 = vpop.f32.mrf.mxu1 }
 0x25f   : > { %v1829_v39 = vpack.c.bf16 %v1266_v36, %v1266_v36  ;;  %v1830_v40 = vpack.c.bf16 %v1318_v38, %v1318_v38 }
 0x260   : > { %v1268_v55 = vpop.f32.mrf.mxu0  ;;  %v1320_v56 = vpop.f32.mrf.mxu1 }
 0x262   : > { %v3294_v57 = vpop.f32.mrf.mxu0  ;;  %v3302_v59 = vpop.f32.mrf.mxu1 }
 0x264   : > { %v1413_v61 = vpop.f32.mrf.mxu0  ;;  %v1465_v63 = vpop.f32.mrf.mxu1 }
 0x265   : > { %v1414_v62 = vadd.f32 %v3121_v58, %v1413_v61  ;;  %v1466_v0 = vadd.f32 %v3122_v60, %v1465_v63 }
 0x266   : > { %v3309_v1 = vpop.f32.mrf.mxu0  ;;  %v3317_v3 = vpop.f32.mrf.mxu1 }
 0x267   : > { %v1831_v2 = vpack.c.bf16 %v1414_v62, %v1414_v62  ;;  %v1832_v5 = vpack.c.bf16 %v1466_v0, %v1466_v0  ;;  %v3153_v1 = vld [vmem:[%s4442_s10] ss:$0 sm:$0xff] }
 0x268   : > { %v1416_v6 = vpop.f32.mrf.mxu0  ;;  %v1468_v9 = vpop.f32.mrf.mxu1 }
 0x269   : > { %v1847_v8 = vsel %vm1842_vm3, %v1831_v2, 0  ;;  %v1893_v10 = vsel %vm1842_vm3, %v1832_v5, 0 }
 0x26a   : > { %v3310_v11 = vpop.f32.mrf.mxu0  ;;  %3368 = vmatpush3.bf16.xpose.msra.mxu0 %v1847_v8  ;;  %v3318_v14 = vpop.f32.mrf.mxu1  ;;  %3374 = vmatpush3.bf16.xpose.msra.mxu1 %v1893_v10 }
 0x26b   : > { %3379 = vmatprep.subr.bf16.mxu0 %v3704_v17  ;;  %3385 = vmatprep.subr.bf16.mxu1 %v3704_v17 }
 0x26c   : > { %v1517_v18 = vpop.f32.mrf.mxu0  ;;  %v1569_v20 = vpop.f32.mrf.mxu1 }
 0x26d   : > { %v1518_v19 = vadd.f32 %v3123_v12, %v1517_v18  ;;  %v1570_v22 = vadd.f32 %v3124_v15, %v1569_v20 }
 0x26e   : > { %v3325_v23 = vpop.f32.mrf.mxu0  ;;  %v3333_v26 = vpop.f32.mrf.mxu1 }
 0x26f   : > { %v1833_v25 = vpack.c.bf16 %v1518_v19, %v1518_v19  ;;  %v1834_v29 = vpack.c.bf16 %v1570_v22, %v1570_v22 }
 0x270   : > { %v1520_v30 = vpop.f32.mrf.mxu0  ;;  %v1572_v33 = vpop.f32.mrf.mxu1 }
 0x271   : > { %v1939_v32 = vsel %vm1842_vm3, %v1833_v25, 0  ;;  %3370 = vmatmul.mubr.msk.bf16.vlgmr.msra.gmra.mxu0 %vm1842_vm3, %v1827_v24  ;;  %v1985_v34 = vsel %vm1842_vm3, %v1834_v29, 0  ;;  %3376 = vmatmul.mubr.msk.bf16.vlgmr.msra.gmra.mxu1 %vm1842_vm3, %v1828_v27 }
 0x272   : > { %v3326_v35 = vpop.f32.mrf.mxu0  ;;  %3380 = vmatpush3.bf16.xpose.msra.mxu0 %v1939_v32  ;;  %v3334_v37 = vpop.f32.mrf.mxu1  ;;  %3386 = vmatpush3.bf16.xpose.msra.mxu1 %v1985_v34 }
 0x273   : > { %3381 = vmatprep.mubr.msk.bf16.mxu0 %vm3705_vm1, %v3704_v17  ;;  %3387 = vmatprep.mubr.msk.bf16.mxu1 %vm3705_vm1, %v3704_v17 }
 0x274   : > { %3391 = vmatprep.subr.bf16.mxu0 %v3704_v17  ;;  %3397 = vmatprep.subr.bf16.mxu1 %v3704_v17 }
 0x275   : > { %v1665_v42 = vpop.f32.mrf.mxu0  ;;  %v1717_v48 = vpop.f32.mrf.mxu1 }
 0x276   : > { %v1666_v43 = vadd.f32 %v3137_v41, %v1665_v42  ;;  %v1718_v50 = vadd.f32 %v3138_v45, %v1717_v48 }
 0x277   : > { %v3341_v44 = vpop.f32.mrf.mxu0  ;;  %v3349_v52 = vpop.f32.mrf.mxu1 }
 0x278   : > { %v2075_v46 = vpack.c.bf16 %v1666_v43, %v1666_v43  ;;  %v2076_v53 = vpack.c.bf16 %v1718_v50, %v1718_v50  ;;  %v3139_v50 = vld [vmem:[%s3950_s28 + $0x2] ss:$0 sm:$0xff] }
 0x279   : > { %3382 = vmatmul.mubr.msk.bf16.vlgmr.msra.gmra.mxu0 %vm1842_vm3, %v1829_v39  ;;  %3388 = vmatmul.mubr.msk.bf16.vlgmr.msra.gmra.mxu1 %vm1842_vm3, %v1830_v40  ;;  %v1668_v47 = vpop.f32.mrf.mxu0  ;;  %v1720_v54 = vpop.f32.mrf.mxu1 }
 0x27a   : > { %3393 = vmatprep.mubr.msk.bf16.mxu0 %vm3705_vm1, %v3704_v17  ;;  %3399 = vmatprep.mubr.msk.bf16.mxu1 %vm3705_vm1, %v3704_v17  ;;  %v2084_v49 = vsel %vm2082_vm4, %v2075_v46, 0  ;;  %v2130_v56 = vsel %vm2082_vm4, %v2076_v53, 0  ;;  %v3140_v53 = vld [vmem:[%s3950_s28 + $0x3] ss:$0 sm:$0xff] }
 0x27b   : > { %v3342_v51 = vpop.f32.mrf.mxu0  ;;  %3392 = vmatpush3.bf16.msra.mxu0 %v2084_v49  ;;  %v3350_v57 = vpop.f32.mrf.mxu1  ;;  %3398 = vmatpush3.bf16.msra.mxu1 %v2130_v56 }
 0x27c   : > { %3403 = vmatprep.subr.bf16.mxu0 %v3704_v17  ;;  %3409 = vmatprep.subr.bf16.mxu1 %v3704_v17 }
 0x27d   : > { %v4151_v55 = vpop.f32.mrf.mxu0 }
 0x27e   : > { %v4155_v60 = vpop.f32.mrf.mxu1  ;;  %v1770_v52 = vadd.f32 %v3139_v50, %v4151_v55 }
 0x27f   : > { %v3357_v58 = vpop.f32.mrf.mxu0 }
 0x280   : > { %v3365_v62 = vpop.f32.mrf.mxu1  ;;  %v2077_v57 = vpack.c.bf16 %v1770_v52, %v1770_v52  ;;  %v1822_v58 = vadd.f32 %v3140_v53, %v4155_v60 }
 0x281   : > { %v1772_v59 = vpop.f32.mrf.mxu0 }
 0x282   : > { %v1824_v63 = vpop.f32.mrf.mxu1 }
 0x283   : > { %v3358_v61 = vpop.f32.mrf.mxu0  ;;  %v2176_v63 = vsel %vm2082_vm4, %v2077_v57, 0  ;;  %v3166_v57 = vld [vmem:[%s4443_s9] ss:$0 sm:$0xff] }
 0x284   : > { %v3366_v0 = vpop.f32.mrf.mxu1 }
 0x285   : > { %v2078_v0 = vpack.c.bf16 %v1822_v58, %v1822_v58 }
 0x287   : > { %v2222_v60 = vsel %vm2082_vm4, %v2078_v0, 0 }
 0x331   : > { %v1883_v2 = vpop.f32.mrf.mxu0  ;;  %v1929_v4 = vpop.f32.mrf.mxu1 }
 0x332   : > { %v1884_v3 = vadd.f32 %v3153_v1, %v1883_v2  ;;  %v1930_v6 = vadd.f32 %v3153_v1, %v1929_v4 }
 0x333   : > { %v3371_v5 = vpop.f32.mrf.mxu0  ;;  %v3377_v7 = vpop.f32.mrf.mxu1 }
 0x334   : > { %v2027_v8 = vsel %vm1842_vm3, %v1884_v3, -inf  ;;  %v2030_v13 = vsel %vm1842_vm3, %v1930_v6, -inf }
 0x335   : > { %2028 = vmax.xlane.f32.xlu0 %v2027_v8  ;;  %v1886_v9 = vpop.f32.mrf.mxu0  ;;  %v1932_v10 = vpop.f32.mrf.mxu1 }
 0x336   : > { %v2269_v10 = vld [vmem:[%s3956_s25 + $0x4] sm:$0xf] }
 0x337   : > { %v3372_v11 = vpop.f32.mrf.mxu0  ;;  %v3378_v12 = vpop.f32.mrf.mxu1 }
 0x338   : > { %v2322_v11 = vsel %vm2082_vm4, %v2269_v10, 0  ;;  %v2270_v12 = vld [vmem:[%s3956_s25 + $0x8] sm:$0xf] }
 0x339   : > { %2031 = vmax.xlane.f32.xlu0 %v2030_v13  ;;  %v1975_v14 = vpop.f32.mrf.mxu0  ;;  %v2021_v15 = vpop.f32.mrf.mxu1 }
 0x33a   : > { %v1976_v16 = vadd.f32 %v3153_v1, %v1975_v14  ;;  %v2022_v19 = vadd.f32 %v3153_v1, %v2021_v15  ;;  %v2368_v15 = vsel %vm2082_vm4, %v2270_v12, 0 }
 0x33b   : > { %v3383_v18 = vpop.f32.mrf.mxu0  ;;  %v3389_v20 = vpop.f32.mrf.mxu1 }
 0x33c   : > { %v2033_v22 = vsel %vm1842_vm3, %v1976_v16, -inf  ;;  %v2036_v27 = vsel %vm1842_vm3, %v2022_v19, -inf  ;;  %v2271_v18 = vld [vmem:[%s3956_s25 + $0xc] sm:$0xf] }
 0x33d   : > { %2034 = vmax.xlane.f32.xlu1 %v2033_v22  ;;  %v1978_v23 = vpop.f32.mrf.mxu0  ;;  %v2024_v24 = vpop.f32.mrf.mxu1 }
 0x33e   : > { %v2414_v23 = vsel %vm2082_vm4, %v2271_v18, 0  ;;  %v3578_v18 = vld [vmem:[%s3987_s24 + $0x18] sm:$0xff]  }
 0x33f   : > { %v3384_v25 = vpop.f32.mrf.mxu0  ;;  %v3390_v26 = vpop.f32.mrf.mxu1 }
 0x341   : > { %2037 = vmax.xlane.f32.xlu1 %v2036_v27 }
 0x3be   : > { %v2029_v28 = vpop.xlane.xlu0 %2028 }
 0x3bf   : > { %v2039_v29 = vsub.f32 %v1884_v3, %v2029_v28  ;;  %v2268_v3 = vld [vmem:[%s3956_s25] sm:$0xf]  ;;  %s4448_s25 = sld [smem:[#allocation8_spill]] }
 0x3c1   : > { %v2043_v30 = vmul.f32 1.442695, %v2039_v29 }
 0x3c2   : > { %v2032_v31 = vpop.xlane.xlu0 %2031 }
 0x3c3   : > { %3582 = vpow2.f32 %v2043_v30  ;;  %v2040_v32 = vsub.f32 %v1930_v6, %v2032_v31  ;;  %v2276_v6 = vsel %vm2082_vm4, %v2268_v3, 0 }
 0x3c5   : > { %v2045_v33 = vmul.f32 1.442695, %v2040_v32  ;;  %p3181_p1 = scmp.ne.s32.totalorder %s4448_s25, 1 }
 0x3c6   : > { %v2035_v34 = vpop.xlane.xlu1 %2034  ;;  %s4449_s8 = sld [smem:[#allocation36_spill]] (!%p3181_p1) }
 0x3c7   : > { %3584 = vpow2.f32 %v2045_v33  ;;  %v2041_v35 = vsub.f32 %v1976_v16, %v2035_v34  ;;  %s4451_s2 = sld [smem:[#allocation37_spill]] (!%p3181_p1) }
 0x3c8   : > { %s4452_s23 = sld [smem:[#allocation39_spill]] (!%p3181_p1) }
 0x3c9   : > { %v2047_v36 = vmul.f32 1.442695, %v2041_v35 }
 0x3ca   : > { %v2038_v37 = vpop.xlane.xlu1 %2037 }
 0x3cb   : > { %3586 = vpow2.f32 %v2047_v36  ;;  %v2042_v38 = vsub.f32 %v2022_v19, %v2038_v37 }
 0x3cd   : > { %v2049_v39 = vmul.f32 1.442695, %v2042_v38 }
 0x3cf   : > { %3588 = vpow2.f32 %v2049_v39 }
 0x3d0   : > { %v3583_v40 = vpop.eup %3582 }
 0x3d1   : > { %v2051_v41 = vsel %vm1842_vm3, %v3583_v40, 0.0 }
 0x3d2   : > { %2052 = vadd.xlane.f32.xlu0 %v2051_v41 }
 0x3d4   : > { %v3585_v42 = vpop.eup %3584 }
 0x3d5   : > { %v2054_v43 = vsel %vm1842_vm3, %v3585_v42, 0.0 }
 0x3d6   : > { %2055 = vadd.xlane.f32.xlu1 %v2054_v43 }
 0x3d8   : > { %v3587_v44 = vpop.eup %3586 }
 0x3d9   : > { %v2057_v45 = vsel %vm1842_vm3, %v3587_v44, 0.0 }
 0x3da   : > { %2058 = vadd.xlane.f32.xlu0 %v2057_v45 }
 0x3dc   : > { %v3589_v46 = vpop.eup %3588 }
 0x3dd   : > { %v2060_v47 = vsel %vm1842_vm3, %v3589_v46, 0.0 }
 0x3de   : > { %2061 = vadd.xlane.f32.xlu1 %v2060_v47 }
 0x45b   : > { %v2053_v48 = vpop.xlane.xlu0 %2052 }
 0x45c   : > { %3590 = vrcp.f32 %v2053_v48 }
 0x45f   : > { %v2056_v49 = vpop.xlane.xlu1 %2055 }
 0x460   : > { %3592 = vrcp.f32 %v2056_v49 }
 0x463   : > { %v2059_v51 = vpop.xlane.xlu0 %2058 }
 0x464   : > { %3594 = vrcp.f32 %v2059_v51 }
 0x467   : > { %v2062_v54 = vpop.xlane.xlu1 %2061 }
 0x468   : > { %3596 = vrcp.f32 %v2062_v54 }
 0x469   : > { %v3591_v56 = vpop.eup %3590 }
 0x46a   : > { %v2067_v59 = vmul.f32 %v3591_v56, %v3583_v40 }
 0x46c   : > { %v2071_v61 = vpack.c.bf16 %v2067_v59, %v2067_v59 }
 0x46d   : > { %v3593_v62 = vpop.eup %3592 }
 0x46e   : > { %3394 = vmatmul.mubr.msk.bf16.vlgmr.msra.gmra.mxu0 %vm1842_vm3, %v2071_v61  ;;  %v2068_v1 = vmul.f32 %v3593_v62, %v3585_v42 }
 0x46f   : > { %3404 = vmatpush3.bf16.msra.mxu0 %v2176_v63  ;;  %3405 = vmatprep.mubr.msk.bf16.mxu0 %vm3705_vm1, %v3704_v17 }
 0x470   : > { %v2072_v55 = vpack.c.bf16 %v2068_v1, %v2068_v1  ;;  %3415 = vmatprep.subr.bf16.mxu0 %v3704_v17 }
 0x471   : > { %v3595_v2 = vpop.eup %3594 }
 0x472   : > { %3400 = vmatmul.mubr.msk.bf16.vlgmr.msra.gmra.mxu1 %vm1842_vm3, %v2072_v55  ;;  %v2069_v4 = vmul.f32 %v3595_v2, %v3587_v44 }
 0x473   : > { %3410 = vmatpush3.bf16.msra.mxu1 %v2222_v60  ;;  %3411 = vmatprep.mubr.msk.bf16.mxu1 %vm3705_vm1, %v3704_v17 }
 0x474   : > { %v2073_v5 = vpack.c.bf16 %v2069_v4, %v2069_v4  ;;  %3421 = vmatprep.subr.bf16.mxu1 %v3704_v17 }
 0x475   : > { %v3597_v7 = vpop.eup %3596 }
 0x476   : > { %3406 = vmatmul.mubr.msk.bf16.vlgmr.msra.gmra.mxu0 %vm1842_vm3, %v2073_v5  ;;  %v2070_v8 = vmul.f32 %v3597_v7, %v3589_v46  ;;  %v3577_v7 = vld [vmem:[%s3973_s19] sm:$0xff]  }
 0x477   : > { %3416 = vmatpush3.bf16.msra.mxu0 %v2276_v6  ;;  %3417 = vmatprep.mubr.msk.bf16.mxu0 %vm3705_vm1, %v3704_v17  ;;  %v3576_v6 = vld [vmem:[%s3973_s19 + $0x8] sm:$0xff]   ;;  %s4445_s19 = scalar_lea.vmem %s4352_s13, %s3910_s4 }
 0x478   : > { %v2074_v9 = vpack.c.bf16 %v2070_v8, %v2070_v8  ;;  %3427 = vmatprep.subr.bf16.mxu0 %v3704_v17 }
 0x47a   : > { %3412 = vmatmul.mubr.msk.bf16.vlgmr.msra.gmra.mxu1 %vm1842_vm3, %v2074_v9 }
 0x47b   : > { %3423 = vmatprep.mubr.msk.bf16.mxu1 %vm3705_vm1, %v3704_v17  ;;  %3422 = vmatpush3.bf16.msra.mxu1 %v2322_v11  ;;  %v3167_v11 = vld [vmem:[%s4444_s30] ss:$0 sm:$0xff]  ;;  %s4450_s30 = sld [smem:[#allocation38_spill]] (!%p3181_p1) }
 0x47c   : > { %3433 = vmatprep.subr.bf16.mxu1 %v3704_v17 }
 0x52e   : > { %v2120_v13 = vpop.f32.mrf.mxu0 }
 0x52f   : > { %v2264_v14 = vpack.c.bf16 %v2120_v13, %v2120_v13  ;;  %v3168_v13 = vld [vmem:[%s4445_s19] ss:$0 sm:$0xff] }
 0x530   : > { %v3395_v16 = vpop.f32.mrf.mxu0 }
 0x531   : > { %3418 = vmatmul.mubr.msk.bf16.vlgmr.msra.gmra.mxu0 %vm1842_vm3, %v2264_v14 }
 0x532   : > { %v2123_v19 = vpop.f32.mrf.mxu0  ;;  %v2166_v20 = vpop.f32.mrf.mxu1  ;;  %3428 = vmatpush3.bf16.msra.mxu0 %v2368_v15  ;;  %3429 = vmatprep.mubr.msk.bf16.mxu0 %vm3705_vm1, %v3704_v17 }
 0x533   : > { %v2265_v22 = vpack.c.bf16 %v2166_v20, %v2166_v20  ;;  %3439 = vmatprep.subr.bf16.mxu0 %v3704_v17  ;;  %v3579_v19 = vld [vmem:[%s3987_s24 + $0x10] sm:$0xff]   ;;  %v3580_v20 = vld [vmem:[%s3987_s24 + $0x8] sm:$0xff]  }
 0x534   : > { %v3396_v24 = vpop.f32.mrf.mxu0  ;;  %v3401_v25 = vpop.f32.mrf.mxu1 }
 0x535   : > { %3424 = vmatmul.mubr.msk.bf16.vlgmr.msra.gmra.mxu1 %vm1842_vm3, %v2265_v22  ;;  %v3581_v22 = vld [vmem:[%s3987_s24] sm:$0xff]  }
 0x536   : > { %v2169_v26 = vpop.f32.mrf.mxu1  ;;  %v2212_v27 = vpop.f32.mrf.mxu0  ;;  %3434 = vmatpush3.bf16.msra.mxu1 %v2414_v23  ;;  %3435 = vmatprep.mubr.msk.bf16.mxu1 %vm3705_vm1, %v3704_v17  ;;  %v3169_v23 = vld [vmem:[%s4446_s21] ss:$0 sm:$0xff] }
 0x537   : > { %v2266_v28 = vpack.c.bf16 %v2212_v27, %v2212_v27  ;;  %3447 = vmatprep.subr.bf16.mxu1 %v3704_v17 }
 0x538   : > { %v3402_v29 = vpop.f32.mrf.mxu1  ;;  %v3407_v30 = vpop.f32.mrf.mxu0 }
 0x539   : > { %3430 = vmatmul.mubr.msk.bf16.vlgmr.msra.gmra.mxu0 %vm1842_vm3, %v2266_v28 }
 0x53a   : > { %v2215_v31 = vpop.f32.mrf.mxu0  ;;  %v2258_v32 = vpop.f32.mrf.mxu1  ;;  %3443 = vmatprep.mubr.msk.bf16.mxu0 %vm3705_vm1, %v3704_v17  ;;  %3440 = vmatpush3.bf16.msra.mxu0 %v3576_v6 }
 0x53b   : > { %v2267_v33 = vpack.c.bf16 %v2258_v32, %v2258_v32  ;;  %3441 = vmatprep.subr.bf16.mxu0 %v3704_v17 }
 0x53c   : > { %v3408_v34 = vpop.f32.mrf.mxu0  ;;  %v3413_v35 = vpop.f32.mrf.mxu1 }
 0x53d   : > { %3436 = vmatmul.mubr.msk.bf16.vlgmr.msra.gmra.mxu1 %vm1842_vm3, %v2267_v33 }
 0x53e   : > { %v2261_v36 = vpop.f32.mrf.mxu1  ;;  %3455 = vmatprep.mubr.msk.bf16.mxu1 %vm3705_vm1, %v3704_v17  ;;  %3442 = vmatpush3.bf16.msra.mxu0 %v3577_v7 }
 0x53f   : > { %3448 = vmatpush3.bf16.msra.mxu1 %v3578_v18 }
 0x540   : > { %v3414_v37 = vpop.f32.mrf.mxu1  ;;  %3449 = vmatprep.subr.bf16.mxu1 %v3704_v17 }
 0x543   : > { %3450 = vmatpush3.bf16.msra.mxu1 %v3579_v19 }
 0x544   : > { %3451 = vmatprep.subr.bf16.mxu1 %v3704_v17 }
 0x547   : > { %3452 = vmatpush3.bf16.msra.mxu1 %v3580_v20 }
 0x548   : > { %3453 = vmatprep.subr.bf16.mxu1 %v3704_v17 }
 0x54b   : > { %3454 = vmatpush3.bf16.msra.mxu1 %v3581_v22 }
 0x5f1   : > { %v2312_v38 = vpop.f32.mrf.mxu0 }
 0x5f2   : > { %v2456_v47 = vsel %vm1123_vm2, %v2312_v38, 0.0  ;;  %v3173_v38 = vld [vmem:[%s1020_s3] ss:$0 sm:$0xff] }
 0x5f3   : > { %v3419_v39 = vpop.f32.mrf.mxu0 }
 0x5f5   : > { %v2315_v40 = vpop.f32.mrf.mxu0  ;;  %v2358_v41 = vpop.f32.mrf.mxu1 }
 0x5f6   : > { %v2457_v44 = vsel %vm1123_vm2, %v2358_v41, 0.0 }
 0x5f7   : > { %v3420_v42 = vpop.f32.mrf.mxu0  ;;  %v3425_v43 = vpop.f32.mrf.mxu1  ;;  %v2458_v49 = vadd.f32 %v2457_v44, %v2456_v47 }
 0x5f9   : > { %v2361_v45 = vpop.f32.mrf.mxu1  ;;  %v2404_v46 = vpop.f32.mrf.mxu0 }
 0x5fa   : > { %v2459_v48 = vsel %vm1123_vm2, %v2404_v46, 0.0 }
 0x5fb   : > { %v3426_v50 = vpop.f32.mrf.mxu1  ;;  %v3431_v51 = vpop.f32.mrf.mxu0  ;;  %v2460_v52 = vadd.f32 %v2459_v48, %v2458_v49 }
 0x5fd   : > { %v2407_v53 = vpop.f32.mrf.mxu0  ;;  %v2450_v54 = vpop.f32.mrf.mxu1 }
 0x5fe   : > { %v2461_v56 = vsel %vm1123_vm2, %v2450_v54, 0.0 }
 0x5ff   : > { %v2462_v58 = vadd.f32 %v2461_v56, %v2460_v52  ;;  %v3432_v59 = vpop.f32.mrf.mxu0  ;;  %v3437_v61 = vpop.f32.mrf.mxu1  ;;  %v3179_v56 = vld [vmem:[%s1023_s22] ss:$0 sm:$0xff] }
 0x601   : > { %v2470_v62 = vadd.f32 %v3166_v57, %v2462_v58  ;;  %v2453_v63 = vpop.f32.mrf.mxu1  ;;  %v3180_v58 = vld [vmem:[%s1026_s14] ss:$0 sm:$0xff] }
 0x603   : > { %v3438_v0 = vpop.f32.mrf.mxu1  ;;  %v2471_v1 = vadd.f32 %v2470_v62, %v4023_v21 }
 0x605   : > { %v2474_v55 = vsel %vm1123_vm2, %v2471_v1, 0.0 }
 0x606   : > { %2475 = vadd.xlane.f32.xlu0 %v2474_v55 }
 0x68f   : > { %v2476_v2 = vpop.xlane.xlu0 %2475 }
 0x690   : > { %v2478_v3 = vmul.f32 0.03125, %v2476_v2 }
 0x692   : > { %v2479_v60 = vsub.f32 %v2471_v1, %v2478_v3 }
 0x694   : > { %v2480_v4 = vmul.f32 %v2479_v60, %v2479_v60 }
 0x696   : > { %v2481_v5 = vsel %vm1123_vm2, %v2480_v4, 0.0 }
 0x697   : > { %2482 = vadd.xlane.f32.xlu1 %v2481_v5 }
 0x720   : > { %v2483_v21 = vpop.xlane.xlu1 %2482 }
 0x721   : > { %v2484_v8 = vmul.f32 0.03125, %v2483_v21 }
 0x723   : > { %v2485_v9 = vadd.f32 1e-12, %v2484_v8 }
 0x725   : > { %3598 = vrsqrt.f32 %v2485_v9 }
 0x732   : > { %v3599_v10 = vpop.eup %3598 }
 0x733   : > { %v2487_v12 = vmul.f32 %v3599_v10, %v2479_v60 }
 0x735   : > { %v2494_v14 = vmul.f32 %v3167_v11, %v2487_v12 }
 0x737   : > { %v2501_v15 = vadd.f32 %v3168_v13, %v2494_v14 }
 0x739   : > { %v2502_v16 = vpack.c.bf16 %v2501_v15, %v2501_v15 }
 0x73b   : > { %3444 = vmatmul.mubr.msk.bf16.vlgmr.msra.gmra.mxu0 %vm1123_vm2, %v2502_v16 }
 0x7fb   : > { %v2563_v24 = vpop.f32.mrf.mxu0 }
 0x7fc   : > { %v2564_v25 = vadd.f32 %v3169_v23, %v2563_v24 }
 0x7fd   : > { %v3445_v26 = vpop.f32.mrf.mxu0 }
 0x7fe   : > { %v2570_v27 = vmul.f32 0.044715, %v2564_v25  ;;  %v2569_v17 = vmul.f32 0.5, %v2564_v25 }
 0x7ff   : > { %v2566_v28 = vpop.f32.mrf.mxu0 }
 0x800   : > { %v2571_v29 = vmul.f32 %v2570_v27, %v2564_v25 }
 0x801   : > { %v3446_v30 = vpop.f32.mrf.mxu0 }
 0x802   : > { %v2572_v31 = vmul.f32 %v2571_v29, %v2564_v25 }
 0x804   : > { %v2573_v32 = vadd.f32 %v2572_v31, %v2564_v25 }
 0x806   : > { %v2574_v33 = vmul.f32 0.7978846, %v2573_v32 }
 0x808   : > { %3600 = vtanh.f32 %v2574_v33 }
 0x815   : > { %v3601_v34 = vpop.eup %3600 }
 0x816   : > { %v2576_v35 = vadd.f32 1.0, %v3601_v34 }
 0x818   : > { %v2577_v36 = vmul.f32 %v2576_v35, %v2569_v17 }
 0x81a   : > { %v2578_v37 = vpack.c.bf16 %v2577_v36, %v2577_v36 }
 0x81c   : > { %3456 = vmatmul.mubr.msk.bf16.vlgmr.msra.gmra.mxu1 %vm2618_vm5, %v2578_v37 }
 0x8dc   : > { %v2656_v39 = vpop.f32.mrf.mxu1 }
 0x8dd   : > { %v2657_v40 = vadd.f32 %v3173_v38, %v2656_v39 }
 0x8de   : > { %v3457_v41 = vpop.f32.mrf.mxu1 }
 0x8df   : > { %v2662_v42 = vadd.f32 %v2657_v40, %v2501_v15 }
 0x8e0   : > { %v2659_v43 = vpop.f32.mrf.mxu1 }
 0x8e1   : > { %v2665_v44 = vsel %vm1123_vm2, %v2662_v42, 0.0 }
 0x8e2   : > { %2666 = vadd.xlane.f32.xlu0 %v2665_v44  ;;  %v3458_v45 = vpop.f32.mrf.mxu1 }
 0x96b   : > { %v2667_v46 = vpop.xlane.xlu0 %2666 }
 0x96c   : > { %v2668_v47 = vmul.f32 0.03125, %v2667_v46 }
 0x96e   : > { %v2669_v48 = vsub.f32 %v2662_v42, %v2668_v47 }
 0x970   : > { %v2670_v49 = vmul.f32 %v2669_v48, %v2669_v48 }
 0x972   : > { %v2671_v50 = vsel %vm1123_vm2, %v2670_v49, 0.0 }
 0x973   : > { %2672 = vadd.xlane.f32.xlu1 %v2671_v50 }
 0x9fc   : > { %v2673_v51 = vpop.xlane.xlu1 %2672 }
 0x9fd   : > { %v2674_v52 = vmul.f32 0.03125, %v2673_v51 }
 0x9ff   : > { %v2675_v53 = vadd.f32 1e-12, %v2674_v52 }
 0xa01   : > { %3602 = vrsqrt.f32 %v2675_v53 }
 0xa0e   : > { %v3603_v54 = vpop.eup %3602 }
 0xa0f   : > { %v2677_v57 = vmul.f32 %v3603_v54, %v2669_v48 }
 0xa11   : > { %v2684_v59 = vmul.f32 %v3179_v56, %v2677_v57  ;;  %2696 = sbr.rel (%p3181_p1) target bundleno = 3001 (0xbb9), region = 124 }
 0xa13   : > { %v2691_v61 = vadd.f32 %v3180_v58, %v2684_v59 }
 0xa15   : > { %2692 = vst.msk [vmem:[#allocation2] sm:$0xff] %vm1123_vm2, %v2691_v61 }
 0xa16   : > { %v3604_v62 = vld [vmem:[%s4449_s8 + $0x8] sm:$0xff]   ;;  %v3706_v63 = vmov 0.0   ;;  %v3605_v0 = vld [vmem:[%s4449_s8] sm:$0xff]   ;;  %vm3707_vm6 = vmmov 0   ;;  %v2697_v1 = vpack.c.bf16 %v2691_v61, %v2691_v61 }
 0xa17   : > { %3459 = vmatprep.subr.bf16.mxu0 %v3706_v63  ;;  %3467 = vmatprep.subr.bf16.mxu1 %v3706_v63  ;;  %v3606_v55 = vld [vmem:[%s4450_s30 + $0x8] sm:$0xff]   ;;  %v3607_v2 = vld [vmem:[%s4450_s30] sm:$0xff]  }
 0xa18   : > { %3460 = vmatpush3.bf16.msra.mxu0 %v3604_v62  ;;  %3463 = vmatprep.mubr.msk.bf16.mxu0 %vm3707_vm6, %v3706_v63  ;;  %v2702_v3 = vld [vmem:[%s4451_s2] sm:$0x1] }
 0xa19   : > { %3461 = vmatprep.subr.bf16.mxu0 %v3706_v63  ;;  %3471 = vmatprep.mubr.msk.bf16.mxu1 %vm3707_vm6, %v3706_v63  ;;  %v2764_v9 = vld [vmem:[%s4452_s23] sm:$0x1] }
 0xa1a   : > { %3468 = vmatpush3.bf16.msra.mxu1 %v3606_v55 }
 0xa1b   : > { %3469 = vmatprep.subr.bf16.mxu1 %v3706_v63 }
 0xa1c   : > { %3462 = vmatpush3.bf16.msra.mxu0 %v3605_v0 }
 0xa1e   : > { %3470 = vmatpush3.bf16.msra.mxu1 %v3607_v2 }
 0xa1f   : > { %3464 = vmatmul.mubr.msk.bf16.vlgmr.msra.gmra.mxu0 %vm1123_vm2, %v2697_v1 }
 0xadf   : > { %v2752_v60 = vpop.f32.mrf.mxu0 }
 0xae0   : > { %v2753_v4 = vadd.f32 %v2752_v60, %v2702_v3 }
 0xae1   : > { %v3465_v5 = vpop.f32.mrf.mxu0 }
 0xae2   : > { %3608 = vtanh.f32 %v2753_v4 }
 0xae3   : > { %v2755_v6 = vpop.f32.mrf.mxu0 }
 0xae5   : > { %v3466_v7 = vpop.f32.mrf.mxu0 }
 0xaef   : > { %v3609_v21 = vpop.eup %3608 }
 0xaf0   : > { %v2759_v8 = vpack.c.bf16 %v3609_v21, %v3609_v21 }
 0xaf2   : > { %3472 = vmatmul.mubr.msk.bf16.vlgmr.msra.gmra.mxu1 %vm1123_vm2, %v2759_v8 }
 0xbb2   : > { %v2814_v10 = vpop.f32.mrf.mxu1 }
 0xbb3   : > { %v2815_v11 = vadd.f32 %v2814_v10, %v2764_v9 }
 0xbb4   : > { %v3473_v12 = vpop.f32.mrf.mxu1 }
 0xbb5   : > { %v2820_v13 = vmax.f32 %v2815_v11, 0.0 }
 0xbb6   : > { %v2817_v14 = vpop.f32.mrf.mxu1 }
 0xbb7   : > { %2821 = vst [vmem:[%s3999_s27] sm:$0x1] %v2820_v13 }
 0xbb8   : > { %v3474_v15 = vpop.f32.mrf.mxu1 }
 0xbb9 PF: > { %s4453_s3 = sld [smem:[#allocation9_spill]]  ;;  %s2835_s9 = sshll.u32 %s3999_s27, 4  ;;  %s2836_s9 = int_to_ptr.vmem [resolvable:$true] %s2835_s9 }
 0xbba   : > { %s4455_s25 = sld [smem:[#allocation40_spill]]  ;;  %s4456_s22 = sand.u32 1, %s3678_s26  }
 0xbbb   : > { %s2823_s0 = scalar_lea.sflag [#allocation4], %s4456_s22  ;;  %s3610_s14 = scalar_lea.vmem %s2836_s9, 16 }
 0xbbc   : > { %p3611_p2 = scmp.ne.s32.totalorder %s2836_s9, %s3610_s14  ;;  %s3708_s4 = smov [#allocation3]  }
 0xbbd   : > { %s3614_s1 = sshll.u32 %s3708_s4, 4  ;;  %s3615_s1 = int_to_ptr.vmem [resolvable:$false] %s3614_s1 }
 0xbbe   : > { %p3612_p4 = pnand %p3611_p2, %p3883_p3  ;;  %s3616_s5 = scalar_lea.vmem %s3615_s1, 32 }
 0xbbf   : > { %s3188_s20 = sshll.u32 %s4453_s3, 4  ;;  %p3617_p6 = scmp.lt.s32.totalorder %s2836_s9, %s3615_s1 }
 0xbc0   : > { %s2833_s28 = scalar_lea.hbm %s4455_s25, %s3188_s20  ;;  %p3613_p5 = pneg %p3612_p4 }
 0xbc1   : > { %p3618_p7 = scmp.lt.s32.totalorder %s3616_s5, %s3610_s14 }
 0xbc3   : > { %p3619_p8 = por %p3618_p7, %p3617_p6 }
 0xbc5   : > { %p3620_p10 = pnand %p3619_p8, %p3613_p5 }
 0xbc7   : > { %3623 = shalt.err (!%p3620_p10)
}
 0xbc8   : > { %s3624_s19 = scalar_lea.hbm %s2833_s28, 16  ;;  %s3628_s2 = scalar_lea.hbm %s4455_s25, 32 }
 0xbc9   : > { %p3625_p11 = scmp.ne.s32.totalorder %s2833_s28, %s3624_s19  ;;  %p3629_p0 = scmp.lt.s32.totalorder %s2833_s28, %s4455_s25 }
 0xbca   : > { %p3630_p1 = scmp.lt.s32.totalorder %s3628_s2, %s3624_s19 }
 0xbcb   : > { %p3626_p12 = pnand %p3625_p11, %p3883_p3 }
 0xbcc   : > { %p3631_p2 = por %p3630_p1, %p3629_p0 }
 0xbcd   : > { %p3627_p13 = pneg %p3626_p12 }
 0xbcf   : > { %p3632_p4 = pnand %p3631_p2, %p3627_p13 }
 0xbd1   : > { %3635 = shalt.err (!%p3632_p4)
}
 0xbd2   : > { %3475 = dma.vmem_to_hbm [thread:$0]  (%p3883_p3), %s2836_s9, 16, %s2833_s28, %s2823_s0  }
 0xbd3 PF: > { %s4457_s23 = sld [smem:[#allocation12_spill]] }
 0xbd4   : > { %s4458_s3 = sld [smem:[#allocation6_spill]] }
 0xbd9   : > { %p3481_p5 = scmp.ge.s32.totalorder %s4457_s23, 2 }
 0xbda   : > { %s2847_s7 = sand.u32 1, %s4458_s3  }
 0xbdb   : > { %p3478_p6 = pnand %p3481_p5, %p3893_p9  ;;  %s2848_s10 = scalar_lea.sflag [#allocation4], %s2847_s7 }
 0xbdd   : > { %p3479_p7 = pneg %p3478_p6 }
 0xbdf   : > { %3669 = dma.done.wait (%p3479_p7), %s2848_s10, 16  }
 0xbe0   : > { %3671 = vsyncadd (%p3479_p7), %s2848_s10, 4294967280  ;;  %s37_s0 = sadd.s32 1, %s4457_s23   ;;  %s4460_s22 = sld [smem:[#allocation7_spill]] }
 0xbe1   : > { %p34_p8 = scmp.ge.s32.totalorder %s37_s0, 6   ;;  %s4461_s27 = sld [smem:[#allocation17_spill]] }
 0xbe2   : > { %s4462_s28 = sld [smem:[#allocation10_spill]]  ;;  %s4466_s5 = smov %s3678_s26 }
 0xbe3   : > { %s4463_s6 = sld [smem:[#allocation11_spill]]  ;;  %36 = sbr.rel (!%p34_p8) target bundleno = 24 (0x18), region = 210 }
 0xbe4   : > { %s4464_s2 = sld [smem:[#allocation13_spill]] }
 0xbe5   : > { %s4465_s29 = sld [smem:[#allocation15_spill]] }
 0xbe6   : > { %s4467_s26 = smov %s4460_s22 }
 0xbe8   :  { %2852 = vsyncpa [#allocation4], 1 }
 0xbe9   :  { %2854 = vsyncpa [#allocation4 + $0x1], 1 }

</bundles_post_ra>
